<compile_context>
chip_gen: v5e
topology: v5e:2x2
jax: 0.10.0
libtpu: 0.0.40
codegen_flags: <defaults>
</compile_context>

<pallas_src>
import functools

import jax
import jax.numpy as jnp
from jax.experimental import pallas as pl
from jax.experimental.pallas import tpu as pltpu


_LANES = 128       # packed-parameter lane width (one vreg row)
_ROW_ALIGN = 16    # bf16 sublane-tile height -> every segment start is aligned


def _round_up(n, m):
    return ((n + m - 1) // m) * m


class _WeightPacker:
    """Packs 2-D weight blocks into one [R, 128] bf16 buffer.

    Each block is zero-padded to 128 lanes and its start row aligned to the
    bf16 sublane tile (16 rows) so in-kernel static row slices never need a
    relayout.  `add` returns the static start row of the block.
    """

    def __init__(self):
        self._parts = []
        self._off = 0

    def add(self, a):
        a = jnp.asarray(a, jnp.float32)
        r, c = a.shape
        assert c <= _LANES, f"block wider than {_LANES} lanes: {a.shape}"
        rp = _round_up(r, _ROW_ALIGN)
        blk = jnp.zeros((rp, _LANES), jnp.float32).at[:r, :c].set(a)
        self._parts.append(blk)
        start = self._off
        self._off += rp
        return start

    def buffer(self):
        return jnp.concatenate(self._parts, axis=0).astype(jnp.bfloat16)


class _VecPacker:
    """Packs 1-D bias/scale vectors as rows of one [V, 128] f32 buffer."""

    def __init__(self):
        self._rows = []

    def add(self, v):
        v = jnp.asarray(v, jnp.float32).reshape(-1)
        assert v.shape[0] <= _LANES
        self._rows.append(
            jnp.zeros((_LANES,), jnp.float32).at[:v.shape[0]].set(v))
        return len(self._rows) - 1

    def buffer(self):
        return jnp.stack(self._rows, axis=0)


def _layer_norm(h, gamma, beta, eps=1e-5):
    mean = jnp.mean(h, axis=-1, keepdims=True)
    var = jnp.mean((h - mean) ** 2, axis=-1, keepdims=True)
    return (h - mean) * jax.lax.rsqrt(var + eps) * gamma + beta


def _fused_forward_kernel(a_ref, x_ref, w_ref, v_ref, o_ref, *, cfg):
    """Whole GCNNet forward in one grid-less kernel; all intermediates in VMEM.

    a_ref : [N, N]   bf16  row-normalized (mean) adjacency
    x_ref : [N, F0]  bf16  node features
    w_ref : [R, 128] bf16  packed matmul weights (static row offsets in cfg)
    v_ref : [V, 128] f32   packed bias / LayerNorm vectors (one per row)
    o_ref : [1, K]   f32   class probabilities
    """
    f32, bf16 = jnp.float32, jnp.bfloat16
    D = cfg["gcn_dim"]

    def wblk(off, rows, cols):
        # Static window into the packed bf16 weight buffer.
        return w_ref[pl.ds(off, rows), pl.ds(0, cols)]

    def vrow(row, cols):
        return v_ref[pl.ds(row, 1), pl.ds(0, cols)]        # [1, cols] f32

    a = a_ref[...]                          # [N, N]  bf16
    x = x_ref[...]                          # [N, F0] bf16

    # ---- GCN layer 0: SAGEConv(mean) = A @ (x Wl^T) + x Wr^T + b, then ReLU.
    # lin_l / lin_r merged into one K=F0 MXU push (review #3); the 128-lane
    # split of the result is free.
    wl0 = wblk(cfg["wl0_off"], cfg["f0"], D)
    wr0 = wblk(cfg["wr0_off"], cfg["f0"], D)
    if D == _LANES:
        xw = jnp.dot(x, jnp.concatenate([wl0, wr0], axis=-1),
                     preferred_element_type=f32)            # [N, 2D]
        xl, xr = xw[:, :D], xw[:, D:]
    else:  # unaligned lane concat not worth it: two K=F0 dots instead
        xl = jnp.dot(x, wl0, preferred_element_type=f32)
        xr = jnp.dot(x, wr0, preferred_element_type=f32)
    h = jnp.dot(a, xl.astype(bf16), preferred_element_type=f32)
    h = jnp.maximum(h + xr + vrow(cfg["bl0_row"], D), 0.0)
    # dropout(p=0.3) is identity in eval mode (reference call is invalid anyway)

    # ---- LayerNorm_{l-1} then GCN layer l (l >= 1).  lin_l / lin_r kept as
    # two K=D dots (no [N, 2D] concat materialization; optimal on v5e's
    # 128-wide MXU granule, equal work on v6e/v7x -- review #7).
    for (g_row, b_row), (wl_off, wr_off, bias_row) in zip(cfg["ln_rows"],
                                                          cfg["gcn_rest"]):
        h = _layer_norm(h, vrow(g_row, D), vrow(b_row, D))
        h_b = h.astype(bf16)
        agg = jnp.dot(a, h_b, preferred_element_type=f32)
        h = (jnp.dot(agg.astype(bf16), wblk(wl_off, D, D),
                     preferred_element_type=f32)
             + jnp.dot(h_b, wblk(wr_off, D, D), preferred_element_type=f32)
             + vrow(bias_row, D))
        h = jnp.maximum(h, 0.0)

    # ---- CNN stage (channel-last, valid padding): Conv1d + ReLU ------------
    # Per-tap K=C_in dots; tap-merged im2col (review #6) intentionally not
    # applied: modest, generation-dependent gain vs. extra lane-relayout ops.
    z = h                                   # [L = N, C] f32, never leaves VMEM
    taps = cfg["ksize"]
    for w_off, b_row, c_in, c_out in cfg["convs"]:
        l_out = z.shape[0] - taps + 1
        z_b = z.astype(bf16)
        acc = vrow(b_row, c_out)            # [1, c_out] -> broadcasts over rows
        for k in range(taps):               # static unroll; sublane-shifted LHS
            acc = acc + jnp.dot(z_b[k:k + l_out, :],
                                wblk(w_off + k * c_in, c_in, c_out),
                                preferred_element_type=f32)
        z = jnp.maximum(acc, 0.0)           # dropout identity in eval mode

    # ---- Head: flatten folded into FC1 (review #2) --------------------------
    # h1 = b1 + sum_l z[l] @ W1[l]  with W1 stored row-grouped per position
    # (flat index = l*c_last + c): no VMEM scratch, no masked-store/reload.
    lf, cl, fcd, ncls = cfg["l_final"], cfg["c_last"], cfg["fc_dim"], cfg["n_cls"]
    z_b = z.astype(bf16)                    # [lf, cl]
    h1 = vrow(cfg["b1_row"], fcd)           # [1, fc_dim] f32
    for l in range(lf):                     # static unroll (lf == 19)
        h1 = h1 + jnp.dot(z_b[l:l + 1, :],
                          wblk(cfg["d1_off"] + l * cl, cl, fcd),
                          preferred_element_type=f32)
    h1 = jnp.maximum(h1, 0.0)

    logits = (jnp.dot(h1.astype(bf16), wblk(cfg["d2_off"], fcd, ncls),
                      preferred_element_type=f32)
              + vrow(cfg["b2_row"], ncls))
    m = jnp.max(logits, axis=-1, keepdims=True)
    e = jnp.exp(logits - m)
    o_ref[...] = (e / jnp.sum(e, axis=-1, keepdims=True)).astype(o_ref.dtype)


# ---------------------------------------------------------------------------
# Model: deterministic parameter construction + single fused pallas_call.
# ---------------------------------------------------------------------------

class GCNNetPallas:
    """GCNNet forward as a single fused, grid-less pallas_call.

    The whole network moves < 1 MiB, so it is launch/DMA-latency bound: all
    parameters are packed at build time into two contiguous buffers (bf16
    matmul weights + f32 bias/LN vectors), so the kernel prologue issues 4
    input DMAs (adj, x, weights, vectors) instead of 19 (review #1).
    """

    def __init__(self, key, num_nodes, K=2, node_hidden_dim=3, gcn_dim=128,
                 gcn_layer_num=2, cnn_dim=16, cnn_layer_num=3,
                 cnn_kernel_size=8, fc_dim=100):
        assert gcn_dim <= _LANES and fc_dim <= _LANES and K <= _LANES
        self.K = K
        self.num_nodes = num_nodes

        keys = iter(jax.random.split(key, 64))

        def nrm(shape, scale=0.05):
            return scale * jax.random.normal(next(keys), shape, jnp.float32)

        wp, vp = _WeightPacker(), _VecPacker()

        # SAGEConv layer 0: Wl^T [F0, D], Wr^T [F0, D], bias [D].
        wl0_off = wp.add(nrm((node_hidden_dim, gcn_dim)))
        wr0_off = wp.add(nrm((node_hidden_dim, gcn_dim)))
        bl0_row = vp.add(nrm((gcn_dim,)))

        # LayerNorm_{l-1} + SAGEConv layer l, for l = 1..gcn_layer_num-1.
        ln_rows, gcn_rest = [], []
        for _ in range(1, gcn_layer_num):
            ln_rows.append((vp.add(jnp.ones((gcn_dim,), jnp.float32)),
                            vp.add(jnp.zeros((gcn_dim,), jnp.float32))))
            gcn_rest.append((wp.add(nrm((gcn_dim, gcn_dim))),
                             wp.add(nrm((gcn_dim, gcn_dim))),
                             vp.add(nrm((gcn_dim,)))))

        # TODO(synk): reference __init__ declares every Conv1d with
        # in_channels=node_hidden_dim, inconsistent with the chained forward
        # (its input is the [N, gcn_dim] GCN output); channels are fixed here
        # to the coherent chain gcn_dim -> 16 -> 32 -> 64.  Weights are stored
        # in the packed buffer as [ksize*C_in, C_out] so the kernel row-slices
        # tap k at static offset k*C_in.
        convs = []
        c_in, c_out = gcn_dim, cnn_dim
        for _ in range(cnn_layer_num):
            assert c_out <= _LANES and c_in % _ROW_ALIGN == 0
            w = nrm((cnn_kernel_size, c_in, c_out))
            convs.append((wp.add(w.reshape(cnn_kernel_size * c_in, c_out)),
                          vp.add(nrm((c_out,))), c_in, c_out))
            c_in, c_out = c_out, c_out * 2

        # TODO(synk): self.d1, self.d2, self.softmax are never defined in the
        # reference __init__; synthesized as Linear(flat, fc_dim),
        # Linear(fc_dim, K) and softmax(dim=1).  The flatten is position-major
        # over the channel-last conv output and is folded into d1 by storing
        # its weight row-grouped per position (flat index = l*c_last + c).
        l_final = num_nodes - cnn_layer_num * (cnn_kernel_size - 1)
        assert l_final > 0
        c_last = c_in                      # last conv's out-channel count
        assert c_last % _ROW_ALIGN == 0
        d1_off = wp.add(nrm((l_final * c_last, fc_dim)))
        b1_row = vp.add(nrm((fc_dim,)))
        d2_off = wp.add(nrm((fc_dim, K)))
        b2_row = vp.add(nrm((K,)))

        self.wbuf = wp.buffer()            # [R, 128] bf16 packed matmul weights
        self.vbuf = vp.buffer()            # [V, 128] f32 packed bias / LN rows

        self._cfg = dict(
            gcn_dim=gcn_dim, f0=node_hidden_dim, ksize=cnn_kernel_size,
            wl0_off=wl0_off, wr0_off=wr0_off, bl0_row=bl0_row,
            ln_rows=tuple(ln_rows), gcn_rest=tuple(gcn_rest),
            convs=tuple(convs),
            l_final=l_final, c_last=c_last, fc_dim=fc_dim, n_cls=K,
            d1_off=d1_off, b1_row=b1_row, d2_off=d2_off, b2_row=b2_row,
        )

    def __call__(self, x, adj_mean):
        # Single grid-less call: total footprint < 1 MiB, far below VMEM on
        # v5e/v6e (128 MiB) and v7x (64 MiB); a grid would only add per-step
        # overhead.  bf16 operands halve MXU passes and operand traffic
        # (review #4); accumulation stays f32 via preferred_element_type.
        # TODO(synk): if a batch of graphs exists, add a leading "parallel"
        # grid axis (constant index_maps for the two packed parameter buffers)
        # to amortize weight DMAs and use v7x's second TensorCore (review #5);
        # for large N, tile the A @ h aggregation with BlockSpecs instead of
        # keeping the dense adjacency resident (review #9).
        kern = functools.partial(_fused_forward_kernel, cfg=self._cfg)
        return pl.pallas_call(
            kern,
            out_shape=jax.ShapeDtypeStruct((1, self.K), jnp.float32),
            in_specs=[pl.BlockSpec(memory_space=pltpu.MemorySpace.VMEM)] * 4,
            out_specs=pl.BlockSpec(memory_space=pltpu.MemorySpace.VMEM),
        )(adj_mean.astype(jnp.bfloat16), x.astype(jnp.bfloat16),
          self.wbuf, self.vbuf)


def edge_index_to_mean_adj(edge_index, num_nodes):
    """Dense row-normalized adjacency (mean aggregation over in-neighbors)."""
    src, dst = edge_index[0], edge_index[1]
    a = jnp.zeros((num_nodes, num_nodes), jnp.float32).at[dst, src].add(1.0)
    deg = jnp.maximum(a.sum(axis=1, keepdims=True), 1.0)
    return a / deg


if __name__ == "__main__":
    key = jax.random.PRNGKey(0)
    k_x, k_params = jax.random.split(key)

    num_nodes = 40
    node_hidden_dim = 3

    # Node features and a deterministic ring graph (bidirectional edges).
    x = jax.random.normal(k_x, (num_nodes, node_hidden_dim), jnp.float32)
    idx = jnp.arange(num_nodes, dtype=jnp.int32)
    src = jnp.concatenate([idx, (idx + 1) % num_nodes])
    dst = jnp.concatenate([(idx + 1) % num_nodes, idx])
    edge_index = jnp.stack([src, dst])  # [2, 80]
    adj_mean = edge_index_to_mean_adj(edge_index, num_nodes)

    model = GCNNetPallas(k_params, num_nodes=num_nodes,
                         node_hidden_dim=node_hidden_dim)
    out = model(x, adj_mean)
    out = jax.block_until_ready(out)

    assert out.shape == (1, 2)
    assert bool(jnp.all(jnp.isfinite(out)))
    assert abs(float(jnp.sum(out)) - 1.0) < 1e-4  # softmax rows sum to 1
    print("KERNEL_OK")
</pallas_src>

<mosaic_0001>
module attributes {stable_mosaic.version = 11 : i64} {
  func.func @_fused_forward_kernel(%arg0: memref<40x40xbf16, #tpu.memory_space<vmem>>, %arg1: memref<40x3xbf16, #tpu.memory_space<vmem>>, %arg2: memref<3024x128xbf16, #tpu.memory_space<vmem>>, %arg3: memref<9x128xf32, #tpu.memory_space<vmem>>, %arg4: memref<1x2xf32, #tpu.memory_space<vmem>>) attributes {dimension_semantics = [], scalar_prefetch = 0 : i64, scratch_operands = 0 : i64, tpu.core_type = #tpu.core_type<tc>} {
    %c0 = arith.constant 0 : index
    %c0_0 = arith.constant 0 : index
    %0 = vector.load %arg0[%c0, %c0_0] : memref<40x40xbf16, #tpu.memory_space<vmem>>, vector<40x40xbf16>
    %c0_1 = arith.constant 0 : index
    %c0_2 = arith.constant 0 : index
    %1 = vector.load %arg1[%c0_1, %c0_2] : memref<40x3xbf16, #tpu.memory_space<vmem>>, vector<40x3xbf16>
    %c0_3 = arith.constant 0 : index
    %c0_4 = arith.constant 0 : index
    %2 = vector.load %arg2[%c0_3, %c0_4] : memref<3024x128xbf16, #tpu.memory_space<vmem>>, vector<3x128xbf16>
    %c16 = arith.constant 16 : index
    %c0_5 = arith.constant 0 : index
    %3 = vector.load %arg2[%c16, %c0_5] : memref<3024x128xbf16, #tpu.memory_space<vmem>>, vector<3x128xbf16>
    %4 = tpu.concatenate %2, %3 in 1 : vector<3x128xbf16>, vector<3x128xbf16> -> vector<3x256xbf16>
    %cst = arith.constant dense<0.000000e+00> : vector<40x256xf32>
    %5 = tpu.matmul %1, %4, %cst {dimension_numbers = #tpu.dot_dimension_numbers<[1], [0], [0], [1], [0, 0, 1, 1], [], []>} : vector<40x3xbf16>, vector<3x256xbf16>, vector<40x256xf32> -> vector<40x256xf32>
    %6 = vector.extract_strided_slice %5 {offsets = [0, 0], sizes = [40, 128], strides = [1, 1]} : vector<40x256xf32> to vector<40x128xf32>
    %7 = vector.extract_strided_slice %5 {offsets = [0, 128], sizes = [40, 128], strides = [1, 1]} : vector<40x256xf32> to vector<40x128xf32>
    %8 = arith.truncf %6 : vector<40x128xf32> to vector<40x128xbf16>
    %cst_6 = arith.constant dense<0.000000e+00> : vector<40x128xf32>
    %9 = tpu.matmul %0, %8, %cst_6 {dimension_numbers = #tpu.dot_dimension_numbers<[1], [0], [0], [1], [0, 0, 1, 1], [], []>} : vector<40x40xbf16>, vector<40x128xbf16>, vector<40x128xf32> -> vector<40x128xf32>
    %10 = arith.addf %9, %7 : vector<40x128xf32>
    %c0_7 = arith.constant 0 : index
    %c0_8 = arith.constant 0 : index
    %11 = vector.load %arg3[%c0_7, %c0_8] : memref<9x128xf32, #tpu.memory_space<vmem>>, vector<1x128xf32>
    %12 = vector.broadcast %11 : vector<1x128xf32> to vector<40x128xf32>
    %13 = arith.addf %10, %12 : vector<40x128xf32>
    %cst_9 = arith.constant 0.000000e+00 : f32
    %14 = vector.broadcast %cst_9 : f32 to vector<40x128xf32>
    %15 = arith.maximumf %13, %14 : vector<40x128xf32>
    %c1 = arith.constant 1 : index
    %c0_10 = arith.constant 0 : index
    %16 = vector.load %arg3[%c1, %c0_10] : memref<9x128xf32, #tpu.memory_space<vmem>>, vector<1x128xf32>
    %c2 = arith.constant 2 : index
    %c0_11 = arith.constant 0 : index
    %17 = vector.load %arg3[%c2, %c0_11] : memref<9x128xf32, #tpu.memory_space<vmem>>, vector<1x128xf32>
    %cst_12 = arith.constant dense<0.000000e+00> : vector<40xf32>
    %18 = vector.multi_reduction <add>, %15, %cst_12 [1] : vector<40x128xf32> to vector<40xf32>
    %19 = vector.shape_cast %18 : vector<40xf32> to vector<40x1xf32>
    %cst_13 = arith.constant 1.280000e+02 : f32
    %20 = vector.broadcast %cst_13 : f32 to vector<40x1xf32>
    %21 = arith.divf %19, %20 : vector<40x1xf32>
    %22 = vector.broadcast %21 : vector<40x1xf32> to vector<40x128xf32>
    %23 = arith.subf %15, %22 : vector<40x128xf32>
    %24 = arith.mulf %23, %23 : vector<40x128xf32>
    %cst_14 = arith.constant dense<0.000000e+00> : vector<40xf32>
    %25 = vector.multi_reduction <add>, %24, %cst_14 [1] : vector<40x128xf32> to vector<40xf32>
    %26 = vector.shape_cast %25 : vector<40xf32> to vector<40x1xf32>
    %cst_15 = arith.constant 1.280000e+02 : f32
    %27 = vector.broadcast %cst_15 : f32 to vector<40x1xf32>
    %28 = arith.divf %26, %27 : vector<40x1xf32>
    %29 = vector.broadcast %21 : vector<40x1xf32> to vector<40x128xf32>
    %30 = arith.subf %15, %29 : vector<40x128xf32>
    %cst_16 = arith.constant 9.99999974E-6 : f32
    %31 = vector.broadcast %cst_16 : f32 to vector<40x1xf32>
    %32 = arith.addf %28, %31 : vector<40x1xf32>
    %33 = math.rsqrt %32 : vector<40x1xf32>
    %34 = vector.broadcast %33 : vector<40x1xf32> to vector<40x128xf32>
    %35 = arith.mulf %30, %34 : vector<40x128xf32>
    %36 = vector.broadcast %16 : vector<1x128xf32> to vector<40x128xf32>
    %37 = arith.mulf %35, %36 : vector<40x128xf32>
    %38 = vector.broadcast %17 : vector<1x128xf32> to vector<40x128xf32>
    %39 = arith.addf %37, %38 : vector<40x128xf32>
    %40 = arith.truncf %39 : vector<40x128xf32> to vector<40x128xbf16>
    %cst_17 = arith.constant dense<0.000000e+00> : vector<40x128xf32>
    %41 = tpu.matmul %0, %40, %cst_17 {dimension_numbers = #tpu.dot_dimension_numbers<[1], [0], [0], [1], [0, 0, 1, 1], [], []>} : vector<40x40xbf16>, vector<40x128xbf16>, vector<40x128xf32> -> vector<40x128xf32>
    %42 = arith.truncf %41 : vector<40x128xf32> to vector<40x128xbf16>
    %c32 = arith.constant 32 : index
    %c0_18 = arith.constant 0 : index
    %43 = vector.load %arg2[%c32, %c0_18] : memref<3024x128xbf16, #tpu.memory_space<vmem>>, vector<128x128xbf16>
    %cst_19 = arith.constant dense<0.000000e+00> : vector<40x128xf32>
    %44 = tpu.matmul %42, %43, %cst_19 {dimension_numbers = #tpu.dot_dimension_numbers<[1], [0], [0], [1], [0, 0, 1, 1], [], []>} : vector<40x128xbf16>, vector<128x128xbf16>, vector<40x128xf32> -> vector<40x128xf32>
    %c160 = arith.constant 160 : index
    %c0_20 = arith.constant 0 : index
    %45 = vector.load %arg2[%c160, %c0_20] : memref<3024x128xbf16, #tpu.memory_space<vmem>>, vector<128x128xbf16>
    %cst_21 = arith.constant dense<0.000000e+00> : vector<40x128xf32>
    %46 = tpu.matmul %40, %45, %cst_21 {dimension_numbers = #tpu.dot_dimension_numbers<[1], [0], [0], [1], [0, 0, 1, 1], [], []>} : vector<40x128xbf16>, vector<128x128xbf16>, vector<40x128xf32> -> vector<40x128xf32>
    %47 = arith.addf %44, %46 : vector<40x128xf32>
    %c3 = arith.constant 3 : index
    %c0_22 = arith.constant 0 : index
    %48 = vector.load %arg3[%c3, %c0_22] : memref<9x128xf32, #tpu.memory_space<vmem>>, vector<1x128xf32>
    %49 = vector.broadcast %48 : vector<1x128xf32> to vector<40x128xf32>
    %50 = arith.addf %47, %49 : vector<40x128xf32>
    %cst_23 = arith.constant 0.000000e+00 : f32
    %51 = vector.broadcast %cst_23 : f32 to vector<40x128xf32>
    %52 = arith.maximumf %50, %51 : vector<40x128xf32>
    %53 = arith.truncf %52 : vector<40x128xf32> to vector<40x128xbf16>
    %c4 = arith.constant 4 : index
    %c0_24 = arith.constant 0 : index
    %54 = vector.load %arg3[%c4, %c0_24] : memref<9x128xf32, #tpu.memory_space<vmem>>, vector<1x16xf32>
    %55 = vector.extract_strided_slice %53 {offsets = [0, 0], sizes = [33, 128], strides = [1, 1]} : vector<40x128xbf16> to vector<33x128xbf16>
    %c288 = arith.constant 288 : index
    %c0_25 = arith.constant 0 : index
    %56 = vector.load %arg2[%c288, %c0_25] : memref<3024x128xbf16, #tpu.memory_space<vmem>>, vector<128x16xbf16>
    %cst_26 = arith.constant dense<0.000000e+00> : vector<33x16xf32>
    %57 = tpu.matmul %55, %56, %cst_26 {dimension_numbers = #tpu.dot_dimension_numbers<[1], [0], [0], [1], [0, 0, 1, 1], [], []>} : vector<33x128xbf16>, vector<128x16xbf16>, vector<33x16xf32> -> vector<33x16xf32>
    %58 = vector.broadcast %54 : vector<1x16xf32> to vector<33x16xf32>
    %59 = arith.addf %58, %57 : vector<33x16xf32>
    %60 = vector.extract_strided_slice %53 {offsets = [1, 0], sizes = [33, 128], strides = [1, 1]} : vector<40x128xbf16> to vector<33x128xbf16>
    %c416 = arith.constant 416 : index
    %c0_27 = arith.constant 0 : index
    %61 = vector.load %arg2[%c416, %c0_27] : memref<3024x128xbf16, #tpu.memory_space<vmem>>, vector<128x16xbf16>
    %cst_28 = arith.constant dense<0.000000e+00> : vector<33x16xf32>
    %62 = tpu.matmul %60, %61, %cst_28 {dimension_numbers = #tpu.dot_dimension_numbers<[1], [0], [0], [1], [0, 0, 1, 1], [], []>} : vector<33x128xbf16>, vector<128x16xbf16>, vector<33x16xf32> -> vector<33x16xf32>
    %63 = arith.addf %59, %62 : vector<33x16xf32>
    %64 = vector.extract_strided_slice %53 {offsets = [2, 0], sizes = [33, 128], strides = [1, 1]} : vector<40x128xbf16> to vector<33x128xbf16>
    %c544 = arith.constant 544 : index
    %c0_29 = arith.constant 0 : index
    %65 = vector.load %arg2[%c544, %c0_29] : memref<3024x128xbf16, #tpu.memory_space<vmem>>, vector<128x16xbf16>
    %cst_30 = arith.constant dense<0.000000e+00> : vector<33x16xf32>
    %66 = tpu.matmul %64, %65, %cst_30 {dimension_numbers = #tpu.dot_dimension_numbers<[1], [0], [0], [1], [0, 0, 1, 1], [], []>} : vector<33x128xbf16>, vector<128x16xbf16>, vector<33x16xf32> -> vector<33x16xf32>
    %67 = arith.addf %63, %66 : vector<33x16xf32>
    %68 = vector.extract_strided_slice %53 {offsets = [3, 0], sizes = [33, 128], strides = [1, 1]} : vector<40x128xbf16> to vector<33x128xbf16>
    %c672 = arith.constant 672 : index
    %c0_31 = arith.constant 0 : index
    %69 = vector.load %arg2[%c672, %c0_31] : memref<3024x128xbf16, #tpu.memory_space<vmem>>, vector<128x16xbf16>
    %cst_32 = arith.constant dense<0.000000e+00> : vector<33x16xf32>
    %70 = tpu.matmul %68, %69, %cst_32 {dimension_numbers = #tpu.dot_dimension_numbers<[1], [0], [0], [1], [0, 0, 1, 1], [], []>} : vector<33x128xbf16>, vector<128x16xbf16>, vector<33x16xf32> -> vector<33x16xf32>
    %71 = arith.addf %67, %70 : vector<33x16xf32>
    %72 = vector.extract_strided_slice %53 {offsets = [4, 0], sizes = [33, 128], strides = [1, 1]} : vector<40x128xbf16> to vector<33x128xbf16>
    %c800 = arith.constant 800 : index
    %c0_33 = arith.constant 0 : index
    %73 = vector.load %arg2[%c800, %c0_33] : memref<3024x128xbf16, #tpu.memory_space<vmem>>, vector<128x16xbf16>
    %cst_34 = arith.constant dense<0.000000e+00> : vector<33x16xf32>
    %74 = tpu.matmul %72, %73, %cst_34 {dimension_numbers = #tpu.dot_dimension_numbers<[1], [0], [0], [1], [0, 0, 1, 1], [], []>} : vector<33x128xbf16>, vector<128x16xbf16>, vector<33x16xf32> -> vector<33x16xf32>
    %75 = arith.addf %71, %74 : vector<33x16xf32>
    %76 = vector.extract_strided_slice %53 {offsets = [5, 0], sizes = [33, 128], strides = [1, 1]} : vector<40x128xbf16> to vector<33x128xbf16>
    %c928 = arith.constant 928 : index
    %c0_35 = arith.constant 0 : index
    %77 = vector.load %arg2[%c928, %c0_35] : memref<3024x128xbf16, #tpu.memory_space<vmem>>, vector<128x16xbf16>
    %cst_36 = arith.constant dense<0.000000e+00> : vector<33x16xf32>
    %78 = tpu.matmul %76, %77, %cst_36 {dimension_numbers = #tpu.dot_dimension_numbers<[1], [0], [0], [1], [0, 0, 1, 1], [], []>} : vector<33x128xbf16>, vector<128x16xbf16>, vector<33x16xf32> -> vector<33x16xf32>
    %79 = arith.addf %75, %78 : vector<33x16xf32>
    %80 = vector.extract_strided_slice %53 {offsets = [6, 0], sizes = [33, 128], strides = [1, 1]} : vector<40x128xbf16> to vector<33x128xbf16>
    %c1056 = arith.constant 1056 : index
    %c0_37 = arith.constant 0 : index
    %81 = vector.load %arg2[%c1056, %c0_37] : memref<3024x128xbf16, #tpu.memory_space<vmem>>, vector<128x16xbf16>
    %cst_38 = arith.constant dense<0.000000e+00> : vector<33x16xf32>
    %82 = tpu.matmul %80, %81, %cst_38 {dimension_numbers = #tpu.dot_dimension_numbers<[1], [0], [0], [1], [0, 0, 1, 1], [], []>} : vector<33x128xbf16>, vector<128x16xbf16>, vector<33x16xf32> -> vector<33x16xf32>
    %83 = arith.addf %79, %82 : vector<33x16xf32>
    %84 = vector.extract_strided_slice %53 {offsets = [7, 0], sizes = [33, 128], strides = [1, 1]} : vector<40x128xbf16> to vector<33x128xbf16>
    %c1184 = arith.constant 1184 : index
    %c0_39 = arith.constant 0 : index
    %85 = vector.load %arg2[%c1184, %c0_39] : memref<3024x128xbf16, #tpu.memory_space<vmem>>, vector<128x16xbf16>
    %cst_40 = arith.constant dense<0.000000e+00> : vector<33x16xf32>
    %86 = tpu.matmul %84, %85, %cst_40 {dimension_numbers = #tpu.dot_dimension_numbers<[1], [0], [0], [1], [0, 0, 1, 1], [], []>} : vector<33x128xbf16>, vector<128x16xbf16>, vector<33x16xf32> -> vector<33x16xf32>
    %87 = arith.addf %83, %86 : vector<33x16xf32>
    %cst_41 = arith.constant 0.000000e+00 : f32
    %88 = vector.broadcast %cst_41 : f32 to vector<33x16xf32>
    %89 = arith.maximumf %87, %88 : vector<33x16xf32>
    %90 = arith.truncf %89 : vector<33x16xf32> to vector<33x16xbf16>
    %c5 = arith.constant 5 : index
    %c0_42 = arith.constant 0 : index
    %91 = vector.load %arg3[%c5, %c0_42] : memref<9x128xf32, #tpu.memory_space<vmem>>, vector<1x32xf32>
    %92 = vector.extract_strided_slice %90 {offsets = [0, 0], sizes = [26, 16], strides = [1, 1]} : vector<33x16xbf16> to vector<26x16xbf16>
    %c1312 = arith.constant 1312 : index
    %c0_43 = arith.constant 0 : index
    %93 = vector.load %arg2[%c1312, %c0_43] : memref<3024x128xbf16, #tpu.memory_space<vmem>>, vector<16x32xbf16>
    %cst_44 = arith.constant dense<0.000000e+00> : vector<26x32xf32>
    %94 = tpu.matmul %92, %93, %cst_44 {dimension_numbers = #tpu.dot_dimension_numbers<[1], [0], [0], [1], [0, 0, 1, 1], [], []>} : vector<26x16xbf16>, vector<16x32xbf16>, vector<26x32xf32> -> vector<26x32xf32>
    %95 = vector.broadcast %91 : vector<1x32xf32> to vector<26x32xf32>
    %96 = arith.addf %95, %94 : vector<26x32xf32>
    %97 = vector.extract_strided_slice %90 {offsets = [1, 0], sizes = [26, 16], strides = [1, 1]} : vector<33x16xbf16> to vector<26x16xbf16>
    %c1328 = arith.constant 1328 : index
    %c0_45 = arith.constant 0 : index
    %98 = vector.load %arg2[%c1328, %c0_45] : memref<3024x128xbf16, #tpu.memory_space<vmem>>, vector<16x32xbf16>
    %cst_46 = arith.constant dense<0.000000e+00> : vector<26x32xf32>
    %99 = tpu.matmul %97, %98, %cst_46 {dimension_numbers = #tpu.dot_dimension_numbers<[1], [0], [0], [1], [0, 0, 1, 1], [], []>} : vector<26x16xbf16>, vector<16x32xbf16>, vector<26x32xf32> -> vector<26x32xf32>
    %100 = arith.addf %96, %99 : vector<26x32xf32>
    %101 = vector.extract_strided_slice %90 {offsets = [2, 0], sizes = [26, 16], strides = [1, 1]} : vector<33x16xbf16> to vector<26x16xbf16>
    %c1344 = arith.constant 1344 : index
    %c0_47 = arith.constant 0 : index
    %102 = vector.load %arg2[%c1344, %c0_47] : memref<3024x128xbf16, #tpu.memory_space<vmem>>, vector<16x32xbf16>
    %cst_48 = arith.constant dense<0.000000e+00> : vector<26x32xf32>
    %103 = tpu.matmul %101, %102, %cst_48 {dimension_numbers = #tpu.dot_dimension_numbers<[1], [0], [0], [1], [0, 0, 1, 1], [], []>} : vector<26x16xbf16>, vector<16x32xbf16>, vector<26x32xf32> -> vector<26x32xf32>
    %104 = arith.addf %100, %103 : vector<26x32xf32>
    %105 = vector.extract_strided_slice %90 {offsets = [3, 0], sizes = [26, 16], strides = [1, 1]} : vector<33x16xbf16> to vector<26x16xbf16>
    %c1360 = arith.constant 1360 : index
    %c0_49 = arith.constant 0 : index
    %106 = vector.load %arg2[%c1360, %c0_49] : memref<3024x128xbf16, #tpu.memory_space<vmem>>, vector<16x32xbf16>
    %cst_50 = arith.constant dense<0.000000e+00> : vector<26x32xf32>
    %107 = tpu.matmul %105, %106, %cst_50 {dimension_numbers = #tpu.dot_dimension_numbers<[1], [0], [0], [1], [0, 0, 1, 1], [], []>} : vector<26x16xbf16>, vector<16x32xbf16>, vector<26x32xf32> -> vector<26x32xf32>
    %108 = arith.addf %104, %107 : vector<26x32xf32>
    %109 = vector.extract_strided_slice %90 {offsets = [4, 0], sizes = [26, 16], strides = [1, 1]} : vector<33x16xbf16> to vector<26x16xbf16>
    %c1376 = arith.constant 1376 : index
    %c0_51 = arith.constant 0 : index
    %110 = vector.load %arg2[%c1376, %c0_51] : memref<3024x128xbf16, #tpu.memory_space<vmem>>, vector<16x32xbf16>
    %cst_52 = arith.constant dense<0.000000e+00> : vector<26x32xf32>
    %111 = tpu.matmul %109, %110, %cst_52 {dimension_numbers = #tpu.dot_dimension_numbers<[1], [0], [0], [1], [0, 0, 1, 1], [], []>} : vector<26x16xbf16>, vector<16x32xbf16>, vector<26x32xf32> -> vector<26x32xf32>
    %112 = arith.addf %108, %111 : vector<26x32xf32>
    %113 = vector.extract_strided_slice %90 {offsets = [5, 0], sizes = [26, 16], strides = [1, 1]} : vector<33x16xbf16> to vector<26x16xbf16>
    %c1392 = arith.constant 1392 : index
    %c0_53 = arith.constant 0 : index
    %114 = vector.load %arg2[%c1392, %c0_53] : memref<3024x128xbf16, #tpu.memory_space<vmem>>, vector<16x32xbf16>
    %cst_54 = arith.constant dense<0.000000e+00> : vector<26x32xf32>
    %115 = tpu.matmul %113, %114, %cst_54 {dimension_numbers = #tpu.dot_dimension_numbers<[1], [0], [0], [1], [0, 0, 1, 1], [], []>} : vector<26x16xbf16>, vector<16x32xbf16>, vector<26x32xf32> -> vector<26x32xf32>
    %116 = arith.addf %112, %115 : vector<26x32xf32>
    %117 = vector.extract_strided_slice %90 {offsets = [6, 0], sizes = [26, 16], strides = [1, 1]} : vector<33x16xbf16> to vector<26x16xbf16>
    %c1408 = arith.constant 1408 : index
    %c0_55 = arith.constant 0 : index
    %118 = vector.load %arg2[%c1408, %c0_55] : memref<3024x128xbf16, #tpu.memory_space<vmem>>, vector<16x32xbf16>
    %cst_56 = arith.constant dense<0.000000e+00> : vector<26x32xf32>
    %119 = tpu.matmul %117, %118, %cst_56 {dimension_numbers = #tpu.dot_dimension_numbers<[1], [0], [0], [1], [0, 0, 1, 1], [], []>} : vector<26x16xbf16>, vector<16x32xbf16>, vector<26x32xf32> -> vector<26x32xf32>
    %120 = arith.addf %116, %119 : vector<26x32xf32>
    %121 = vector.extract_strided_slice %90 {offsets = [7, 0], sizes = [26, 16], strides = [1, 1]} : vector<33x16xbf16> to vector<26x16xbf16>
    %c1424 = arith.constant 1424 : index
    %c0_57 = arith.constant 0 : index
    %122 = vector.load %arg2[%c1424, %c0_57] : memref<3024x128xbf16, #tpu.memory_space<vmem>>, vector<16x32xbf16>
    %cst_58 = arith.constant dense<0.000000e+00> : vector<26x32xf32>
    %123 = tpu.matmul %121, %122, %cst_58 {dimension_numbers = #tpu.dot_dimension_numbers<[1], [0], [0], [1], [0, 0, 1, 1], [], []>} : vector<26x16xbf16>, vector<16x32xbf16>, vector<26x32xf32> -> vector<26x32xf32>
    %124 = arith.addf %120, %123 : vector<26x32xf32>
    %cst_59 = arith.constant 0.000000e+00 : f32
    %125 = vector.broadcast %cst_59 : f32 to vector<26x32xf32>
    %126 = arith.maximumf %124, %125 : vector<26x32xf32>
    %127 = arith.truncf %126 : vector<26x32xf32> to vector<26x32xbf16>
    %c6 = arith.constant 6 : index
    %c0_60 = arith.constant 0 : index
    %128 = vector.load %arg3[%c6, %c0_60] : memref<9x128xf32, #tpu.memory_space<vmem>>, vector<1x64xf32>
    %129 = vector.extract_strided_slice %127 {offsets = [0, 0], sizes = [19, 32], strides = [1, 1]} : vector<26x32xbf16> to vector<19x32xbf16>
    %c1440 = arith.constant 1440 : index
    %c0_61 = arith.constant 0 : index
    %130 = vector.load %arg2[%c1440, %c0_61] : memref<3024x128xbf16, #tpu.memory_space<vmem>>, vector<32x64xbf16>
    %cst_62 = arith.constant dense<0.000000e+00> : vector<19x64xf32>
    %131 = tpu.matmul %129, %130, %cst_62 {dimension_numbers = #tpu.dot_dimension_numbers<[1], [0], [0], [1], [0, 0, 1, 1], [], []>} : vector<19x32xbf16>, vector<32x64xbf16>, vector<19x64xf32> -> vector<19x64xf32>
    %132 = vector.broadcast %128 : vector<1x64xf32> to vector<19x64xf32>
    %133 = arith.addf %132, %131 : vector<19x64xf32>
    %134 = vector.extract_strided_slice %127 {offsets = [1, 0], sizes = [19, 32], strides = [1, 1]} : vector<26x32xbf16> to vector<19x32xbf16>
    %c1472 = arith.constant 1472 : index
    %c0_63 = arith.constant 0 : index
    %135 = vector.load %arg2[%c1472, %c0_63] : memref<3024x128xbf16, #tpu.memory_space<vmem>>, vector<32x64xbf16>
    %cst_64 = arith.constant dense<0.000000e+00> : vector<19x64xf32>
    %136 = tpu.matmul %134, %135, %cst_64 {dimension_numbers = #tpu.dot_dimension_numbers<[1], [0], [0], [1], [0, 0, 1, 1], [], []>} : vector<19x32xbf16>, vector<32x64xbf16>, vector<19x64xf32> -> vector<19x64xf32>
    %137 = arith.addf %133, %136 : vector<19x64xf32>
    %138 = vector.extract_strided_slice %127 {offsets = [2, 0], sizes = [19, 32], strides = [1, 1]} : vector<26x32xbf16> to vector<19x32xbf16>
    %c1504 = arith.constant 1504 : index
    %c0_65 = arith.constant 0 : index
    %139 = vector.load %arg2[%c1504, %c0_65] : memref<3024x128xbf16, #tpu.memory_space<vmem>>, vector<32x64xbf16>
    %cst_66 = arith.constant dense<0.000000e+00> : vector<19x64xf32>
    %140 = tpu.matmul %138, %139, %cst_66 {dimension_numbers = #tpu.dot_dimension_numbers<[1], [0], [0], [1], [0, 0, 1, 1], [], []>} : vector<19x32xbf16>, vector<32x64xbf16>, vector<19x64xf32> -> vector<19x64xf32>
    %141 = arith.addf %137, %140 : vector<19x64xf32>
    %142 = vector.extract_strided_slice %127 {offsets = [3, 0], sizes = [19, 32], strides = [1, 1]} : vector<26x32xbf16> to vector<19x32xbf16>
    %c1536 = arith.constant 1536 : index
    %c0_67 = arith.constant 0 : index
    %143 = vector.load %arg2[%c1536, %c0_67] : memref<3024x128xbf16, #tpu.memory_space<vmem>>, vector<32x64xbf16>
    %cst_68 = arith.constant dense<0.000000e+00> : vector<19x64xf32>
    %144 = tpu.matmul %142, %143, %cst_68 {dimension_numbers = #tpu.dot_dimension_numbers<[1], [0], [0], [1], [0, 0, 1, 1], [], []>} : vector<19x32xbf16>, vector<32x64xbf16>, vector<19x64xf32> -> vector<19x64xf32>
    %145 = arith.addf %141, %144 : vector<19x64xf32>
    %146 = vector.extract_strided_slice %127 {offsets = [4, 0], sizes = [19, 32], strides = [1, 1]} : vector<26x32xbf16> to vector<19x32xbf16>
    %c1568 = arith.constant 1568 : index
    %c0_69 = arith.constant 0 : index
    %147 = vector.load %arg2[%c1568, %c0_69] : memref<3024x128xbf16, #tpu.memory_space<vmem>>, vector<32x64xbf16>
    %cst_70 = arith.constant dense<0.000000e+00> : vector<19x64xf32>
    %148 = tpu.matmul %146, %147, %cst_70 {dimension_numbers = #tpu.dot_dimension_numbers<[1], [0], [0], [1], [0, 0, 1, 1], [], []>} : vector<19x32xbf16>, vector<32x64xbf16>, vector<19x64xf32> -> vector<19x64xf32>
    %149 = arith.addf %145, %148 : vector<19x64xf32>
    %150 = vector.extract_strided_slice %127 {offsets = [5, 0], sizes = [19, 32], strides = [1, 1]} : vector<26x32xbf16> to vector<19x32xbf16>
    %c1600 = arith.constant 1600 : index
    %c0_71 = arith.constant 0 : index
    %151 = vector.load %arg2[%c1600, %c0_71] : memref<3024x128xbf16, #tpu.memory_space<vmem>>, vector<32x64xbf16>
    %cst_72 = arith.constant dense<0.000000e+00> : vector<19x64xf32>
    %152 = tpu.matmul %150, %151, %cst_72 {dimension_numbers = #tpu.dot_dimension_numbers<[1], [0], [0], [1], [0, 0, 1, 1], [], []>} : vector<19x32xbf16>, vector<32x64xbf16>, vector<19x64xf32> -> vector<19x64xf32>
    %153 = arith.addf %149, %152 : vector<19x64xf32>
    %154 = vector.extract_strided_slice %127 {offsets = [6, 0], sizes = [19, 32], strides = [1, 1]} : vector<26x32xbf16> to vector<19x32xbf16>
    %c1632 = arith.constant 1632 : index
    %c0_73 = arith.constant 0 : index
    %155 = vector.load %arg2[%c1632, %c0_73] : memref<3024x128xbf16, #tpu.memory_space<vmem>>, vector<32x64xbf16>
    %cst_74 = arith.constant dense<0.000000e+00> : vector<19x64xf32>
    %156 = tpu.matmul %154, %155, %cst_74 {dimension_numbers = #tpu.dot_dimension_numbers<[1], [0], [0], [1], [0, 0, 1, 1], [], []>} : vector<19x32xbf16>, vector<32x64xbf16>, vector<19x64xf32> -> vector<19x64xf32>
    %157 = arith.addf %153, %156 : vector<19x64xf32>
    %158 = vector.extract_strided_slice %127 {offsets = [7, 0], sizes = [19, 32], strides = [1, 1]} : vector<26x32xbf16> to vector<19x32xbf16>
    %c1664 = arith.constant 1664 : index
    %c0_75 = arith.constant 0 : index
    %159 = vector.load %arg2[%c1664, %c0_75] : memref<3024x128xbf16, #tpu.memory_space<vmem>>, vector<32x64xbf16>
    %cst_76 = arith.constant dense<0.000000e+00> : vector<19x64xf32>
    %160 = tpu.matmul %158, %159, %cst_76 {dimension_numbers = #tpu.dot_dimension_numbers<[1], [0], [0], [1], [0, 0, 1, 1], [], []>} : vector<19x32xbf16>, vector<32x64xbf16>, vector<19x64xf32> -> vector<19x64xf32>
    %161 = arith.addf %157, %160 : vector<19x64xf32>
    %cst_77 = arith.constant 0.000000e+00 : f32
    %162 = vector.broadcast %cst_77 : f32 to vector<19x64xf32>
    %163 = arith.maximumf %161, %162 : vector<19x64xf32>
    %164 = arith.truncf %163 : vector<19x64xf32> to vector<19x64xbf16>
    %c7 = arith.constant 7 : index
    %c0_78 = arith.constant 0 : index
    %165 = vector.load %arg3[%c7, %c0_78] : memref<9x128xf32, #tpu.memory_space<vmem>>, vector<1x100xf32>
    %166 = vector.extract_strided_slice %164 {offsets = [0, 0], sizes = [1, 64], strides = [1, 1]} : vector<19x64xbf16> to vector<1x64xbf16>
    %c1696 = arith.constant 1696 : index
    %c0_79 = arith.constant 0 : index
    %167 = vector.load %arg2[%c1696, %c0_79] : memref<3024x128xbf16, #tpu.memory_space<vmem>>, vector<64x100xbf16>
    %cst_80 = arith.constant dense<0.000000e+00> : vector<1x100xf32>
    %168 = tpu.matmul %166, %167, %cst_80 {dimension_numbers = #tpu.dot_dimension_numbers<[1], [0], [0], [1], [0, 0, 1, 1], [], []>} : vector<1x64xbf16>, vector<64x100xbf16>, vector<1x100xf32> -> vector<1x100xf32>
    %169 = arith.addf %165, %168 : vector<1x100xf32>
    %170 = vector.extract_strided_slice %164 {offsets = [1, 0], sizes = [1, 64], strides = [1, 1]} : vector<19x64xbf16> to vector<1x64xbf16>
    %c1760 = arith.constant 1760 : index
    %c0_81 = arith.constant 0 : index
    %171 = vector.load %arg2[%c1760, %c0_81] : memref<3024x128xbf16, #tpu.memory_space<vmem>>, vector<64x100xbf16>
    %cst_82 = arith.constant dense<0.000000e+00> : vector<1x100xf32>
    %172 = tpu.matmul %170, %171, %cst_82 {dimension_numbers = #tpu.dot_dimension_numbers<[1], [0], [0], [1], [0, 0, 1, 1], [], []>} : vector<1x64xbf16>, vector<64x100xbf16>, vector<1x100xf32> -> vector<1x100xf32>
    %173 = arith.addf %169, %172 : vector<1x100xf32>
    %174 = vector.extract_strided_slice %164 {offsets = [2, 0], sizes = [1, 64], strides = [1, 1]} : vector<19x64xbf16> to vector<1x64xbf16>
    %c1824 = arith.constant 1824 : index
    %c0_83 = arith.constant 0 : index
    %175 = vector.load %arg2[%c1824, %c0_83] : memref<3024x128xbf16, #tpu.memory_space<vmem>>, vector<64x100xbf16>
    %cst_84 = arith.constant dense<0.000000e+00> : vector<1x100xf32>
    %176 = tpu.matmul %174, %175, %cst_84 {dimension_numbers = #tpu.dot_dimension_numbers<[1], [0], [0], [1], [0, 0, 1, 1], [], []>} : vector<1x64xbf16>, vector<64x100xbf16>, vector<1x100xf32> -> vector<1x100xf32>
    %177 = arith.addf %173, %176 : vector<1x100xf32>
    %178 = vector.extract_strided_slice %164 {offsets = [3, 0], sizes = [1, 64], strides = [1, 1]} : vector<19x64xbf16> to vector<1x64xbf16>
    %c1888 = arith.constant 1888 : index
    %c0_85 = arith.constant 0 : index
    %179 = vector.load %arg2[%c1888, %c0_85] : memref<3024x128xbf16, #tpu.memory_space<vmem>>, vector<64x100xbf16>
    %cst_86 = arith.constant dense<0.000000e+00> : vector<1x100xf32>
    %180 = tpu.matmul %178, %179, %cst_86 {dimension_numbers = #tpu.dot_dimension_numbers<[1], [0], [0], [1], [0, 0, 1, 1], [], []>} : vector<1x64xbf16>, vector<64x100xbf16>, vector<1x100xf32> -> vector<1x100xf32>
    %181 = arith.addf %177, %180 : vector<1x100xf32>
    %182 = vector.extract_strided_slice %164 {offsets = [4, 0], sizes = [1, 64], strides = [1, 1]} : vector<19x64xbf16> to vector<1x64xbf16>
    %c1952 = arith.constant 1952 : index
    %c0_87 = arith.constant 0 : index
    %183 = vector.load %arg2[%c1952, %c0_87] : memref<3024x128xbf16, #tpu.memory_space<vmem>>, vector<64x100xbf16>
    %cst_88 = arith.constant dense<0.000000e+00> : vector<1x100xf32>
    %184 = tpu.matmul %182, %183, %cst_88 {dimension_numbers = #tpu.dot_dimension_numbers<[1], [0], [0], [1], [0, 0, 1, 1], [], []>} : vector<1x64xbf16>, vector<64x100xbf16>, vector<1x100xf32> -> vector<1x100xf32>
    %185 = arith.addf %181, %184 : vector<1x100xf32>
    %186 = vector.extract_strided_slice %164 {offsets = [5, 0], sizes = [1, 64], strides = [1, 1]} : vector<19x64xbf16> to vector<1x64xbf16>
    %c2016 = arith.constant 2016 : index
    %c0_89 = arith.constant 0 : index
    %187 = vector.load %arg2[%c2016, %c0_89] : memref<3024x128xbf16, #tpu.memory_space<vmem>>, vector<64x100xbf16>
    %cst_90 = arith.constant dense<0.000000e+00> : vector<1x100xf32>
    %188 = tpu.matmul %186, %187, %cst_90 {dimension_numbers = #tpu.dot_dimension_numbers<[1], [0], [0], [1], [0, 0, 1, 1], [], []>} : vector<1x64xbf16>, vector<64x100xbf16>, vector<1x100xf32> -> vector<1x100xf32>
    %189 = arith.addf %185, %188 : vector<1x100xf32>
    %190 = vector.extract_strided_slice %164 {offsets = [6, 0], sizes = [1, 64], strides = [1, 1]} : vector<19x64xbf16> to vector<1x64xbf16>
    %c2080 = arith.constant 2080 : index
    %c0_91 = arith.constant 0 : index
    %191 = vector.load %arg2[%c2080, %c0_91] : memref<3024x128xbf16, #tpu.memory_space<vmem>>, vector<64x100xbf16>
    %cst_92 = arith.constant dense<0.000000e+00> : vector<1x100xf32>
    %192 = tpu.matmul %190, %191, %cst_92 {dimension_numbers = #tpu.dot_dimension_numbers<[1], [0], [0], [1], [0, 0, 1, 1], [], []>} : vector<1x64xbf16>, vector<64x100xbf16>, vector<1x100xf32> -> vector<1x100xf32>
    %193 = arith.addf %189, %192 : vector<1x100xf32>
    %194 = vector.extract_strided_slice %164 {offsets = [7, 0], sizes = [1, 64], strides = [1, 1]} : vector<19x64xbf16> to vector<1x64xbf16>
    %c2144 = arith.constant 2144 : index
    %c0_93 = arith.constant 0 : index
    %195 = vector.load %arg2[%c2144, %c0_93] : memref<3024x128xbf16, #tpu.memory_space<vmem>>, vector<64x100xbf16>
    %cst_94 = arith.constant dense<0.000000e+00> : vector<1x100xf32>
    %196 = tpu.matmul %194, %195, %cst_94 {dimension_numbers = #tpu.dot_dimension_numbers<[1], [0], [0], [1], [0, 0, 1, 1], [], []>} : vector<1x64xbf16>, vector<64x100xbf16>, vector<1x100xf32> -> vector<1x100xf32>
    %197 = arith.addf %193, %196 : vector<1x100xf32>
    %198 = vector.extract_strided_slice %164 {offsets = [8, 0], sizes = [1, 64], strides = [1, 1]} : vector<19x64xbf16> to vector<1x64xbf16>
    %c2208 = arith.constant 2208 : index
    %c0_95 = arith.constant 0 : index
    %199 = vector.load %arg2[%c2208, %c0_95] : memref<3024x128xbf16, #tpu.memory_space<vmem>>, vector<64x100xbf16>
    %cst_96 = arith.constant dense<0.000000e+00> : vector<1x100xf32>
    %200 = tpu.matmul %198, %199, %cst_96 {dimension_numbers = #tpu.dot_dimension_numbers<[1], [0], [0], [1], [0, 0, 1, 1], [], []>} : vector<1x64xbf16>, vector<64x100xbf16>, vector<1x100xf32> -> vector<1x100xf32>
    %201 = arith.addf %197, %200 : vector<1x100xf32>
    %202 = vector.extract_strided_slice %164 {offsets = [9, 0], sizes = [1, 64], strides = [1, 1]} : vector<19x64xbf16> to vector<1x64xbf16>
    %c2272 = arith.constant 2272 : index
    %c0_97 = arith.constant 0 : index
    %203 = vector.load %arg2[%c2272, %c0_97] : memref<3024x128xbf16, #tpu.memory_space<vmem>>, vector<64x100xbf16>
    %cst_98 = arith.constant dense<0.000000e+00> : vector<1x100xf32>
    %204 = tpu.matmul %202, %203, %cst_98 {dimension_numbers = #tpu.dot_dimension_numbers<[1], [0], [0], [1], [0, 0, 1, 1], [], []>} : vector<1x64xbf16>, vector<64x100xbf16>, vector<1x100xf32> -> vector<1x100xf32>
    %205 = arith.addf %201, %204 : vector<1x100xf32>
    %206 = vector.extract_strided_slice %164 {offsets = [10, 0], sizes = [1, 64], strides = [1, 1]} : vector<19x64xbf16> to vector<1x64xbf16>
    %c2336 = arith.constant 2336 : index
    %c0_99 = arith.constant 0 : index
    %207 = vector.load %arg2[%c2336, %c0_99] : memref<3024x128xbf16, #tpu.memory_space<vmem>>, vector<64x100xbf16>
    %cst_100 = arith.constant dense<0.000000e+00> : vector<1x100xf32>
    %208 = tpu.matmul %206, %207, %cst_100 {dimension_numbers = #tpu.dot_dimension_numbers<[1], [0], [0], [1], [0, 0, 1, 1], [], []>} : vector<1x64xbf16>, vector<64x100xbf16>, vector<1x100xf32> -> vector<1x100xf32>
    %209 = arith.addf %205, %208 : vector<1x100xf32>
    %210 = vector.extract_strided_slice %164 {offsets = [11, 0], sizes = [1, 64], strides = [1, 1]} : vector<19x64xbf16> to vector<1x64xbf16>
    %c2400 = arith.constant 2400 : index
    %c0_101 = arith.constant 0 : index
    %211 = vector.load %arg2[%c2400, %c0_101] : memref<3024x128xbf16, #tpu.memory_space<vmem>>, vector<64x100xbf16>
    %cst_102 = arith.constant dense<0.000000e+00> : vector<1x100xf32>
    %212 = tpu.matmul %210, %211, %cst_102 {dimension_numbers = #tpu.dot_dimension_numbers<[1], [0], [0], [1], [0, 0, 1, 1], [], []>} : vector<1x64xbf16>, vector<64x100xbf16>, vector<1x100xf32> -> vector<1x100xf32>
    %213 = arith.addf %209, %212 : vector<1x100xf32>
    %214 = vector.extract_strided_slice %164 {offsets = [12, 0], sizes = [1, 64], strides = [1, 1]} : vector<19x64xbf16> to vector<1x64xbf16>
    %c2464 = arith.constant 2464 : index
    %c0_103 = arith.constant 0 : index
    %215 = vector.load %arg2[%c2464, %c0_103] : memref<3024x128xbf16, #tpu.memory_space<vmem>>, vector<64x100xbf16>
    %cst_104 = arith.constant dense<0.000000e+00> : vector<1x100xf32>
    %216 = tpu.matmul %214, %215, %cst_104 {dimension_numbers = #tpu.dot_dimension_numbers<[1], [0], [0], [1], [0, 0, 1, 1], [], []>} : vector<1x64xbf16>, vector<64x100xbf16>, vector<1x100xf32> -> vector<1x100xf32>
    %217 = arith.addf %213, %216 : vector<1x100xf32>
    %218 = vector.extract_strided_slice %164 {offsets = [13, 0], sizes = [1, 64], strides = [1, 1]} : vector<19x64xbf16> to vector<1x64xbf16>
    %c2528 = arith.constant 2528 : index
    %c0_105 = arith.constant 0 : index
    %219 = vector.load %arg2[%c2528, %c0_105] : memref<3024x128xbf16, #tpu.memory_space<vmem>>, vector<64x100xbf16>
    %cst_106 = arith.constant dense<0.000000e+00> : vector<1x100xf32>
    %220 = tpu.matmul %218, %219, %cst_106 {dimension_numbers = #tpu.dot_dimension_numbers<[1], [0], [0], [1], [0, 0, 1, 1], [], []>} : vector<1x64xbf16>, vector<64x100xbf16>, vector<1x100xf32> -> vector<1x100xf32>
    %221 = arith.addf %217, %220 : vector<1x100xf32>
    %222 = vector.extract_strided_slice %164 {offsets = [14, 0], sizes = [1, 64], strides = [1, 1]} : vector<19x64xbf16> to vector<1x64xbf16>
    %c2592 = arith.constant 2592 : index
    %c0_107 = arith.constant 0 : index
    %223 = vector.load %arg2[%c2592, %c0_107] : memref<3024x128xbf16, #tpu.memory_space<vmem>>, vector<64x100xbf16>
    %cst_108 = arith.constant dense<0.000000e+00> : vector<1x100xf32>
    %224 = tpu.matmul %222, %223, %cst_108 {dimension_numbers = #tpu.dot_dimension_numbers<[1], [0], [0], [1], [0, 0, 1, 1], [], []>} : vector<1x64xbf16>, vector<64x100xbf16>, vector<1x100xf32> -> vector<1x100xf32>
    %225 = arith.addf %221, %224 : vector<1x100xf32>
    %226 = vector.extract_strided_slice %164 {offsets = [15, 0], sizes = [1, 64], strides = [1, 1]} : vector<19x64xbf16> to vector<1x64xbf16>
    %c2656 = arith.constant 2656 : index
    %c0_109 = arith.constant 0 : index
    %227 = vector.load %arg2[%c2656, %c0_109] : memref<3024x128xbf16, #tpu.memory_space<vmem>>, vector<64x100xbf16>
    %cst_110 = arith.constant dense<0.000000e+00> : vector<1x100xf32>
    %228 = tpu.matmul %226, %227, %cst_110 {dimension_numbers = #tpu.dot_dimension_numbers<[1], [0], [0], [1], [0, 0, 1, 1], [], []>} : vector<1x64xbf16>, vector<64x100xbf16>, vector<1x100xf32> -> vector<1x100xf32>
    %229 = arith.addf %225, %228 : vector<1x100xf32>
    %230 = vector.extract_strided_slice %164 {offsets = [16, 0], sizes = [1, 64], strides = [1, 1]} : vector<19x64xbf16> to vector<1x64xbf16>
    %c2720 = arith.constant 2720 : index
    %c0_111 = arith.constant 0 : index
    %231 = vector.load %arg2[%c2720, %c0_111] : memref<3024x128xbf16, #tpu.memory_space<vmem>>, vector<64x100xbf16>
    %cst_112 = arith.constant dense<0.000000e+00> : vector<1x100xf32>
    %232 = tpu.matmul %230, %231, %cst_112 {dimension_numbers = #tpu.dot_dimension_numbers<[1], [0], [0], [1], [0, 0, 1, 1], [], []>} : vector<1x64xbf16>, vector<64x100xbf16>, vector<1x100xf32> -> vector<1x100xf32>
    %233 = arith.addf %229, %232 : vector<1x100xf32>
    %234 = vector.extract_strided_slice %164 {offsets = [17, 0], sizes = [1, 64], strides = [1, 1]} : vector<19x64xbf16> to vector<1x64xbf16>
    %c2784 = arith.constant 2784 : index
    %c0_113 = arith.constant 0 : index
    %235 = vector.load %arg2[%c2784, %c0_113] : memref<3024x128xbf16, #tpu.memory_space<vmem>>, vector<64x100xbf16>
    %cst_114 = arith.constant dense<0.000000e+00> : vector<1x100xf32>
    %236 = tpu.matmul %234, %235, %cst_114 {dimension_numbers = #tpu.dot_dimension_numbers<[1], [0], [0], [1], [0, 0, 1, 1], [], []>} : vector<1x64xbf16>, vector<64x100xbf16>, vector<1x100xf32> -> vector<1x100xf32>
    %237 = arith.addf %233, %236 : vector<1x100xf32>
    %238 = vector.extract_strided_slice %164 {offsets = [18, 0], sizes = [1, 64], strides = [1, 1]} : vector<19x64xbf16> to vector<1x64xbf16>
    %c2848 = arith.constant 2848 : index
    %c0_115 = arith.constant 0 : index
    %239 = vector.load %arg2[%c2848, %c0_115] : memref<3024x128xbf16, #tpu.memory_space<vmem>>, vector<64x100xbf16>
    %cst_116 = arith.constant dense<0.000000e+00> : vector<1x100xf32>
    %240 = tpu.matmul %238, %239, %cst_116 {dimension_numbers = #tpu.dot_dimension_numbers<[1], [0], [0], [1], [0, 0, 1, 1], [], []>} : vector<1x64xbf16>, vector<64x100xbf16>, vector<1x100xf32> -> vector<1x100xf32>
    %241 = arith.addf %237, %240 : vector<1x100xf32>
    %cst_117 = arith.constant 0.000000e+00 : f32
    %242 = vector.broadcast %cst_117 : f32 to vector<1x100xf32>
    %243 = arith.maximumf %241, %242 : vector<1x100xf32>
    %244 = arith.truncf %243 : vector<1x100xf32> to vector<1x100xbf16>
    %c2912 = arith.constant 2912 : index
    %c0_118 = arith.constant 0 : index
    %245 = vector.load %arg2[%c2912, %c0_118] : memref<3024x128xbf16, #tpu.memory_space<vmem>>, vector<100x2xbf16>
    %cst_119 = arith.constant dense<0.000000e+00> : vector<1x2xf32>
    %246 = tpu.matmul %244, %245, %cst_119 {dimension_numbers = #tpu.dot_dimension_numbers<[1], [0], [0], [1], [0, 0, 1, 1], [], []>} : vector<1x100xbf16>, vector<100x2xbf16>, vector<1x2xf32> -> vector<1x2xf32>
    %c8 = arith.constant 8 : index
    %c0_120 = arith.constant 0 : index
    %247 = vector.load %arg3[%c8, %c0_120] : memref<9x128xf32, #tpu.memory_space<vmem>>, vector<1x2xf32>
    %248 = arith.addf %246, %247 : vector<1x2xf32>
    %cst_121 = arith.constant dense<0xFF800000> : vector<1xf32>
    %249 = vector.multi_reduction <maximumf>, %248, %cst_121 [1] : vector<1x2xf32> to vector<1xf32>
    %250 = vector.shape_cast %249 : vector<1xf32> to vector<1x1xf32>
    %251 = vector.broadcast %250 : vector<1x1xf32> to vector<1x2xf32>
    %252 = arith.subf %248, %251 : vector<1x2xf32>
    %253 = math.exp %252 : vector<1x2xf32>
    %cst_122 = arith.constant dense<0.000000e+00> : vector<1xf32>
    %254 = vector.multi_reduction <add>, %253, %cst_122 [1] : vector<1x2xf32> to vector<1xf32>
    %255 = vector.shape_cast %254 : vector<1xf32> to vector<1x1xf32>
    %256 = vector.broadcast %255 : vector<1x1xf32> to vector<1x2xf32>
    %257 = arith.divf %253, %256 : vector<1x2xf32>
    %c0_123 = arith.constant 0 : index
    %c0_124 = arith.constant 0 : index
    %258 = vector.load %arg4[%c0_123, %c0_124] : memref<1x2xf32, #tpu.memory_space<vmem>>, vector<1x2xf32>
    tpu.vector_store %arg4[%c0_123, %c0_124], %257 {strides = array<i32>} : memref<1x2xf32, #tpu.memory_space<vmem>>, vector<1x2xf32>,
    return
  }
}

</mosaic_0001>

<bundles_post_ra>
// kernel: tpu_custom_call.1
= control target key start
LH: loop header
LB: loop body
LE: loop exit
PB: predicated region body
PF: predicated region fallthrough
CT: control target
= control target key end

     0   :  { %9 = vsyncpa [#allocation3], 0  ;;  %s4799_s0 = inlined_call_operand.vmem [shape: bf16[40,40], index: 0, kind: input, shape index: {}]   ;;  %s4800_s1 = inlined_call_operand.vmem [shape: bf16[40,3], index: 1, kind: input, shape index: {}]   ;;  %s4801_s2 = inlined_call_operand.hbm [shape: bf16[3024,128], index: 2, kind: input, shape index: {}]   ;;  %s4802_s3 = inlined_call_operand.hbm [shape: f32[9,128], index: 3, kind: input, shape index: {}]   ;;  %s4803_s4 = inlined_call_operand.hbm [shape: f32[1,2], index: 4, kind: output, shape index: {}]  }
   0x1   :  { %10 = vsyncpa [#allocation6], 0 }
   0x2   :  { %11 = vsyncpa [#allocation4], 0  ;;  %s20_s17 = sshll.u32 %s4801_s2, 4  ;;  %s4401_s18 = smov [#allocation2]   ;;  %s21_s17 = int_to_ptr.hbm [resolvable:$true] %s20_s17 }
   0x3   :  { %s22_s19 = sshll.u32 %s4401_s18, 4  ;;  %s33_s22 = sshll.u32 %s4802_s3, 4  ;;  %s23_s19 = int_to_ptr.vmem [resolvable:$true] %s22_s19  ;;  %s34_s22 = int_to_ptr.hbm [resolvable:$true] %s33_s22 }
   0x4   :  { %s4402_s23 = smov 64   ;;  %s4403_s24 = smov 4  }
   0x5   :  { %28 = dma.hbm_to_vmem [thread:$0]  %s21_s17, 24192, %s23_s19, [#allocation3], %s4402_s23, %s4402_s23, %s4403_s24  }
   0x6   :  { %s4404_s25 = smov [#allocation5]   ;;  %s4405_s27 = smov 128  }
   0x7   :  { %s35_s26 = sshll.u32 %s4404_s25, 4  ;;  %s4406_s28 = smov 8   ;;  %s36_s26 = int_to_ptr.vmem [resolvable:$true] %s35_s26 }
   0x8   :  { %41 = dma.hbm_to_vmem [thread:$0]  %s34_s22, 256, %s36_s26, [#allocation6], %s4405_s27, %s4405_s27, %s4406_s28  }
   0x9   :  { %4395 = dma.done.wait [#allocation3], 24192  }
   0xa   :  { %4396 = vsyncadd [#allocation3], 4294943104 }
   0xb   :  { %4397 = dma.done.wait [#allocation6], 256  }
   0xc   :  { %4398 = vsyncadd [#allocation6], 4294967040  ;;  %vm86_vm0 = vcmask 1040384   ;;  %vm87_vm1 = vcmask 1041408   ;;  %v4407_v0 = vmov 65535   ;;  %v4102_v5 = vld [vmem:[%s4800_s1] sm:$0xff] }
   0xd   :  { %v88_v1 = vsel %vm86_vm0, 4294967295, %v4407_v0  ;;  %v61_v3 = vld [vmem:[#allocation2] sm:$0x3]  ;;  %vm76_vm2 = vcmask 23552   ;;  %v4103_v6 = vld [vmem:[%s4800_s1 + $0x8] sm:$0xff]  ;;  %vm168_vm3 = vcmask 1043456  }
   0xe   :  { %v89_v2 = vsel %vm87_vm1, %v88_v1, 0  ;;  %v60_v7 = vld [vmem:[%s4800_s1 + $0x10] sm:$0xf]  ;;  %v62_v10 = vld [vmem:[#allocation2 + $0x8] sm:$0x3]  ;;  %v4461_v22 = vld [vmem:[%s4799_s0] sm:$0xff] }
   0xf   :  { %v91_v4 = vand.u32 %v89_v2, %v61_v3  ;;  %v72_v8 = vunpack.c.l.b16 %v60_v7  ;;  %v94_v11 = vand.u32 %v89_v2, %v62_v10  ;;  %vm158_vm4 = vcmask 326656   ;;  %v4468_v23 = vld [vmem:[%s4799_s0 + $0x8] sm:$0xff]  ;;  %v55_v24 = vld [vmem:[%s4799_s0 + $0x10] sm:$0xf]  ;;  %s4409_s0 = smov [#allocation7]   ;;  %s3265_s15 = sshll.u32 %s4803_s4, 4  ;;  %s3266_s15 = int_to_ptr.hbm [resolvable:$true] %s3265_s15 }
  0x10   :  { %v154_v25 = vunpack.c.l.b16 %v55_v24  ;;  %v4300_v34 = vld [vmem:[#allocation5] ss:$0 sm:$0xff]  ;;  %v4408_v55 = vmov 128.0   ;;  %s3263_s12 = sshll.u32 %s4409_s0, 4  ;;  %s3264_s12 = int_to_ptr.vmem [resolvable:$true] %s3263_s12 }
  0x11   :  { %103 = vmatpush.bf16.msra.mxu0 %v91_v4  ;;  %v75_v9 = vpack.c.b16 %v72_v8, %v72_v8  ;;  %4290 = vmatpush.bf16.msra.mxu2 %v94_v11  ;;  %4307 = vrcp.f32 %v4408_v55 }
  0x12   :  { %126 = vmatpush.bf16.msra.mxu1 %v94_v11  ;;  %v4475_v26 = vpack.c.b16 %v154_v25, %v154_v25 }
  0x14   :  { %3284 = vmatmul.msk.bf16.vlgmr.msra.gmra.mxu0 %vm76_vm2, %v4102_v5  ;;  %3289 = vmatmul.msk.bf16.vlgmr.msra.gmra.mxu2 %vm76_vm2, %v75_v9 }
  0x15   :  { %3287 = vmatmul.msk.bf16.vlgmr.msra.gmra.mxu1 %vm76_vm2, %v4102_v5 }
  0x17   :  { %v4308_v56 = vpop.eup %4307 }
  0x18   :  { %v220_v57 = vmul.f32 128.0, %v4308_v56  ;;  %vm224_vm5 = vweird.f32 %v4308_v56 }
  0x1a   :  { %v221_v58 = vsub.f32 1.0, %v220_v57 }
  0x1c   :  { %v222_v59 = vmul.f32 %v4308_v56, %v221_v58 }
  0x1e   :  { %v223_v60 = vadd.f32 %v4308_v56, %v222_v59 }
  0x20   :  { %v4479_v61 = vsel %vm224_vm5, %v4308_v56, %v223_v60 }
  0x24   :  { %3285 = vmatmul.msk.bf16.gmra.mxu0 %vm76_vm2, %v4103_v6 }
  0x25   :  { %3288 = vmatmul.msk.bf16.gmra.mxu1 %vm76_vm2, %v4103_v6 }
  0x34   :  { %3286 = vmatmul.msk.bf16.gmra.mxu0 %vm76_vm2, %v75_v9 }
  0x91   :  { %v105_v12 = vpop.f32.mrf.mxu0 }
  0x92   :  { %v128_v29 = vpop.f32.mrf.mxu1 }
  0x97   :  { %v138_v27 = vpop.f32.mrf.mxu2 }
  0x99   :  { %v107_v13 = vpop.f32.mrf.mxu0 }
  0x9a   :  { %v142_v21 = vpack.c.bf16 %v107_v13, %v105_v12  ;;  %v130_v31 = vpop.f32.mrf.mxu1 }
  0x9f   :  { %v140_v28 = vpop.f32.mrf.mxu2 }
  0xa0   :  { %v4115_v28 = vld [vmem:[#allocation2 + $0x68] sm:$0xff] }
  0xa1   :  { %v110_v14 = vpop.f32.mrf.mxu0 }
  0xa2   :  { %v133_v36 = vpop.f32.mrf.mxu1 }
  0xa9   :  { %v112_v15 = vpop.f32.mrf.mxu0 }
  0xaa   :  { %v143_v19 = vpack.c.bf16 %v112_v15, %v110_v14  ;;  %v135_v39 = vpop.f32.mrf.mxu1 }
  0xb1   :  { %v115_v16 = vpop.f32.mrf.mxu0 }
  0xb2   :  { %v144_v17 = vpack.c.bf16 %v115_v16, %v115_v16 }
  0xb4   :  { %v170_v18 = vsel %vm168_vm3, %v144_v17, 0 }
  0xb5   :  { %177 = vmatpush.bf16.msrb.mxu2 %v170_v18  ;;  %v4119_v18 = vld [vmem:[#allocation2 + $0x88] sm:$0xff] }
  0xb6   :  { %440 = vmatpush.bf16.msrb.mxu0 %v4119_v18 }
  0xb9   :  { %v117_v20 = vpop.f32.mrf.mxu0  ;;  %178 = vmatpush.bf16.msrb.mxu2 %v143_v19  ;;  %v4118_v19 = vld [vmem:[#allocation2 + $0x80] sm:$0xff] }
  0xba   :  { %441 = vmatpush.bf16.msrb.mxu0 %v4118_v19  ;;  %v4117_v20 = vld [vmem:[#allocation2 + $0x78] sm:$0xff] }
  0xbd   :  { %179 = vmatpush.bf16.msrb.mxu2 %v142_v21 }
  0xbe   :  { %442 = vmatpush.bf16.msrb.mxu0 %v4117_v20 }
  0xc0   :  { %3298 = vmatmul.msk.bf16.vlgmr.msrb.gmra.mxu2 %vm158_vm4, %v4461_v22 }
  0xd0   :  { %3299 = vmatmul.msk.bf16.gmra.mxu2 %vm158_vm4, %v4468_v23 }
  0xe0   :  { %3300 = vmatmul.msk.bf16.gmra.mxu2 %vm158_vm4, %v4475_v26 }
 0x143   :  { %v181_v30 = vpop.f32.mrf.mxu2 }
 0x144   :  { %v182_v43 = vadd.f32 %v181_v30, %v128_v29 }
 0x146   :  { %v197_v47 = vadd.f32 %v4300_v34, %v182_v43 }
 0x148   :  { %v202_v51 = vmax.f32 %v197_v47, 0.0 }
 0x14b   :  { %v183_v32 = vpop.f32.mrf.mxu2 }
 0x14c   :  { %v184_v33 = vadd.f32 %v183_v32, %v130_v31 }
 0x14e   :  { %v198_v35 = vadd.f32 %v4300_v34, %v184_v33  ;;  %v4114_v33 = vld [vmem:[#allocation2 + $0x60] sm:$0xff] }
 0x150   :  { %v203_v37 = vmax.f32 %v198_v35, 0.0  ;;  %v4113_v35 = vld [vmem:[#allocation2 + $0x58] sm:$0xff] }
 0x152   :  { %211 = vadd.xlane.f32.xlu2 %v203_v37 }
 0x153   :  { %v186_v38 = vpop.f32.mrf.mxu2 }
 0x154   :  { %v187_v49 = vadd.f32 %v186_v38, %v133_v36 }
 0x156   :  { %v199_v53 = vadd.f32 %v4300_v34, %v187_v49 }
 0x158   :  { %v204_v54 = vmax.f32 %v199_v53, 0.0 }
 0x15b   :  { %v188_v40 = vpop.f32.mrf.mxu2 }
 0x15c   :  { %v189_v41 = vadd.f32 %v188_v40, %v135_v39 }
 0x15e   :  { %v200_v42 = vadd.f32 %v4300_v34, %v189_v41  ;;  %v4112_v41 = vld [vmem:[#allocation2 + $0x50] sm:$0xff] }
 0x160   :  { %v205_v44 = vmax.f32 %v200_v42, 0.0 }
 0x162   :  { %215 = vadd.xlane.f32.xlu1 %v205_v44 }
 0x163   :  { %v191_v45 = vpop.f32.mrf.mxu2 }
 0x164   :  { %v192_v46 = vadd.f32 %v191_v45, %v138_v27  ;;  %v4116_v27 = vld [vmem:[#allocation2 + $0x70] sm:$0xff] }
 0x165   :  { %443 = vmatpush.bf16.msrb.mxu0 %v4116_v27 }
 0x166   :  { %v201_v48 = vadd.f32 %v4300_v34, %v192_v46 }
 0x168   :  { %v206_v50 = vmax.f32 %v201_v48, 0.0 }
 0x169   :  { %444 = vmatpush.bf16.msrb.mxu0 %v4115_v28 }
 0x16a   :  { %217 = vadd.xlane.f32.xlu0 %v206_v50  ;;  %209 = vadd.xlane.f32.xlu1 %v202_v51 }
 0x16b   :  { %v193_v52 = vpop.f32.mrf.mxu2 }
 0x16d   :  { %445 = vmatpush.bf16.msrb.mxu0 %v4114_v33 }
 0x171   :  { %446 = vmatpush.bf16.msrb.mxu0 %v4113_v35 }
 0x172   :  { %213 = vadd.xlane.f32.xlu0 %v204_v54 }
 0x175   :  { %447 = vmatpush.bf16.msrb.mxu0 %v4112_v41  ;;  %v4111_v41 = vld [vmem:[#allocation2 + $0x48] sm:$0xff] }
 0x176   :  { %511 = vmatpush.bf16.msrb.mxu1 %v4111_v41 }
 0x1c5   :  { %v212_v11 = vpop.xlane.xlu2 %211 }
 0x1c6   :  { %v227_v13 = vmul.f32 %v4479_v61, %v212_v11 }
 0x1c8   :  { %v4502_v16 = vsub.f32 %v203_v37, %v227_v13 }
 0x1ca   :  { %v237_v17 = vmul.f32 %v4502_v16, %v4502_v16 }
 0x1d5   :  { %v216_v62 = vpop.xlane.xlu1 %215 }
 0x1d6   :  { %v229_v63 = vmul.f32 %v4479_v61, %v216_v62 }
 0x1d8   :  { %v4482_v0 = vsub.f32 %v205_v44, %v229_v63 }
 0x1da   :  { %v239_v1 = vmul.f32 %v4482_v0, %v4482_v0 }
 0x1dc   :  { %247 = vadd.xlane.f32.xlu1 %v239_v1  ;;  %v4301_v1 = vld [vmem:[#allocation5 + $0x1] ss:$0 sm:$0xff] }
 0x1dd   :  { %v218_v2 = vpop.xlane.xlu0 %217  ;;  %v210_v4 = vpop.xlane.xlu1 %209 }
 0x1de   :  { %v230_v3 = vmul.f32 %v4479_v61, %v218_v2  ;;  %v226_v6 = vmul.f32 %v4479_v61, %v210_v4 }
 0x1e0   :  { %v4487_v5 = vsub.f32 %v206_v50, %v230_v3  ;;  %v4492_v9 = vsub.f32 %v202_v51, %v226_v6 }
 0x1e2   :  { %v240_v7 = vmul.f32 %v4487_v5, %v4487_v5  ;;  %v236_v15 = vmul.f32 %v4492_v9, %v4492_v9 }
 0x1e4   :  { %249 = vadd.xlane.f32.xlu2 %v240_v7  ;;  %v4302_v7 = vld [vmem:[#allocation5 + $0x2] ss:$0 sm:$0xff] }
 0x1e5   :  { %v214_v8 = vpop.xlane.xlu0 %213 }
 0x1e6   :  { %v228_v10 = vmul.f32 %v4479_v61, %v214_v8 }
 0x1e8   :  { %v4495_v12 = vsub.f32 %v204_v54, %v228_v10 }
 0x1ea   :  { %v238_v14 = vmul.f32 %v4495_v12, %v4495_v12 }
 0x1ec   :  { %245 = vadd.xlane.f32.xlu0 %v238_v14  ;;  %241 = vadd.xlane.f32.xlu2 %v236_v15 }
 0x1f4   :  { %243 = vadd.xlane.f32.xlu0 %v237_v17 }
 0x24f   :  { %v248_v21 = vpop.xlane.xlu1 %247 }
 0x250   :  { %v254_v24 = vmul.f32 %v248_v21, %v4479_v61 }
 0x252   :  { %v259_v25 = vadd.f32 1e-05, %v254_v24 }
 0x254   :  { %4309 = vrsqrt.f32 %v259_v25  ;;  %vm297_vm10 = vweird.f32 %v259_v25 }
 0x257   :  { %v250_v29 = vpop.xlane.xlu2 %249 }
 0x258   :  { %v255_v30 = vmul.f32 %v250_v29, %v4479_v61 }
 0x25a   :  { %v4310_v31 = vpop.eup %4309  ;;  %v260_v32 = vadd.f32 1e-05, %v255_v30 }
 0x25b   :  { %v292_v34 = vmul.f32 %v4310_v31, %v259_v25  ;;  %vm298_vm7 = vweird.f32 %v4310_v31 }
 0x25c   :  { %4311 = vrsqrt.f32 %v260_v32  ;;  %vm307_vm8 = vweird.f32 %v260_v32  ;;  %vm299_vm11 = vmor %vm297_vm10, %vm298_vm7  ;;  %vm1211_vm10 = vcmask 1044480  }
 0x25d   :  { %v293_v36 = vmul.f32 %v4310_v31, %v292_v34 }
 0x25f   :  { %v246_v37 = vpop.xlane.xlu0 %245  ;;  %v242_v38 = vpop.xlane.xlu2 %241  ;;  %v294_v45 = vmul.f32 0.5, %v293_v36 }
 0x260   :  { %v253_v39 = vmul.f32 %v246_v37, %v4479_v61  ;;  %v251_v40 = vmul.f32 %v242_v38, %v4479_v61 }
 0x261   :  { %v295_v48 = vsub.f32 1.5, %v294_v45  ;;  %v4104_v45 = vld [vmem:[#allocation2 + $0x10] sm:$0xff] }
 0x262   :  { %v4312_v42 = vpop.eup %4311  ;;  %v258_v43 = vadd.f32 1e-05, %v253_v39  ;;  %v256_v44 = vadd.f32 1e-05, %v251_v40 }
 0x263   :  { %v302_v46 = vmul.f32 %v4312_v42, %v260_v32  ;;  %vm308_vm6 = vweird.f32 %v4312_v42  ;;  %v296_v56 = vmul.f32 %v4310_v31, %v295_v48 }
 0x264   :  { %4313 = vrsqrt.f32 %v258_v43  ;;  %vm309_vm9 = vmor %vm307_vm8, %vm308_vm6  ;;  %vm287_vm13 = vweird.f32 %v258_v43  ;;  %vm267_vm0 = vweird.f32 %v256_v44  ;;  %vm896_vm8 = vsmask.f32 6400 }
 0x265   :  { %v303_v47 = vmul.f32 %v4312_v42, %v302_v46  ;;  %4315 = vrsqrt.f32 %v256_v44  ;;  %v300_v3 = vsel %vm299_vm11, %v4310_v31, %v296_v56  ;;  %vm1104_vm11 = vsmask.f32 5376 }
 0x266   :  { %v314_v14 = vmul.f32 %v300_v3, %v4482_v0  ;;  %v4134_v3 = vld [vmem:[#allocation2 + $0x100] sm:$0xff] }
 0x267   :  { %v304_v49 = vmul.f32 0.5, %v303_v47  ;;  %v244_v50 = vpop.xlane.xlu0 %243 }
 0x268   :  { %v252_v51 = vmul.f32 %v244_v50, %v4479_v61  ;;  %v320_v25 = vmul.f32 %v4301_v1, %v314_v14  ;;  %v4133_v14 = vld [vmem:[#allocation2 + $0xf8] sm:$0xff] }
 0x269   :  { %v305_v52 = vsub.f32 1.5, %v304_v49 }
 0x26a   :  { %v4314_v53 = vpop.eup %4313  ;;  %v257_v54 = vadd.f32 1e-05, %v252_v51  ;;  %v326_v31 = vadd.f32 %v4302_v7, %v320_v25  ;;  %v4135_v51 = vld [vmem:[#allocation2 + $0x108] sm:$0xff]  ;;  %v4130_v25 = vld [vmem:[#allocation2 + $0xe0] sm:$0xff] }
 0x26b   :  { %v4316_v55 = vpop.eup %4315  ;;  %v306_v57 = vmul.f32 %v4312_v42, %v305_v52  ;;  %v282_v58 = vmul.f32 %v4314_v53, %v258_v43  ;;  %vm288_vm12 = vweird.f32 %v4314_v53  ;;  %v4107_v43 = vld [vmem:[#allocation2 + $0x28] sm:$0xff]  ;;  %v4126_v52 = vld [vmem:[#allocation2 + $0xc0] sm:$0xff] }
 0x26c   :  { %v262_v59 = vmul.f32 %v4316_v55, %v256_v44  ;;  %4317 = vrsqrt.f32 %v257_v54  ;;  %vm268_vm14 = vweird.f32 %v4316_v55  ;;  %vm289_vm15 = vmor %vm287_vm13, %vm288_vm12  ;;  %vm277_vm6 = vweird.f32 %v257_v54  ;;  %v4106_v44 = vld [vmem:[#allocation2 + $0x20] sm:$0xff] }
 0x26d   :  { %v283_v60 = vmul.f32 %v4314_v53, %v282_v58  ;;  %v310_v62 = vsel %vm309_vm9, %v4312_v42, %v306_v57  ;;  %vm269_vm2 = vmor %vm267_vm0, %vm268_vm14  ;;  %v4109_v42 = vld [vmem:[#allocation2 + $0x38] sm:$0xff]  ;;  %vm1003_vm9 = vcmask 1045504   ;;  %vm1312_vm12 = vsmask.f32 4352 }
 0x26e   :  { %v263_v63 = vmul.f32 %v4316_v55, %v262_v59  ;;  %v315_v61 = vmul.f32 %v310_v62, %v4487_v5  ;;  %vm1432_vm13 = vcmask 130048   ;;  %vm1806_vm14 = vcmask 261120  }
 0x26f   :  { %v284_v2 = vmul.f32 0.5, %v283_v60  ;;  %vm3232_vm0 = vcmask 8192  }
 0x270   :  { %v264_v4 = vmul.f32 0.5, %v263_v63  ;;  %v321_v6 = vmul.f32 %v4301_v1, %v315_v61  ;;  %v4124_v61 = vld [vmem:[#allocation2 + $0xb0] sm:$0xff] }
 0x271   :  { %v285_v8 = vsub.f32 1.5, %v284_v2  ;;  %v4143_v2 = vld [vmem:[#allocation2 + $0x148] sm:$0xff] }
 0x272   :  { %v4318_v10 = vpop.eup %4317  ;;  %v265_v11 = vsub.f32 1.5, %v264_v4  ;;  %v327_v13 = vadd.f32 %v4302_v7, %v321_v6  ;;  %v4122_v4 = vld [vmem:[#allocation2 + $0xa0] sm:$0xff]  ;;  %852 = vmatpush.bf16.msra.mxu0 %v4143_v2  ;;  %v4151_v6 = vld [vmem:[#allocation2 + $0x188] sm:$0xff] }
 0x273   :  { %v286_v15 = vmul.f32 %v4314_v53, %v285_v8  ;;  %v272_v17 = vmul.f32 %v4318_v10, %v257_v54  ;;  %vm278_vm5 = vweird.f32 %v4318_v10  ;;  %v4121_v8 = vld [vmem:[#allocation2 + $0x98] sm:$0xff]  ;;  %v4182_v2 = vld [vmem:[#allocation2 + $0x280] sm:$0xff] }
 0x274   :  { %v266_v18 = vmul.f32 %v4316_v55, %v265_v11  ;;  %v330_v5 = vpack.c.bf16 %v327_v13, %v327_v13  ;;  %vm279_vm7 = vmor %vm277_vm6, %vm278_vm5  ;;  %v4141_v11 = vld [vmem:[#allocation2 + $0x138] sm:$0xff]  ;;  %v4120_v13 = vld [vmem:[#allocation2 + $0x90] sm:$0xff] }
 0x275   :  { %v273_v19 = vmul.f32 %v4318_v10, %v272_v17  ;;  %v290_v20 = vsel %vm289_vm15, %v4314_v53, %v286_v15  ;;  %v4140_v15 = vld [vmem:[#allocation2 + $0x130] sm:$0xff]  ;;  %v4149_v17 = vld [vmem:[#allocation2 + $0x178] sm:$0xff]  ;;  %vm2226_vm15 = vcmask 523264  }
 0x276   :  { %v332_v21 = vsel %vm168_vm3, %v330_v5, 0  ;;  %v313_v24 = vmul.f32 %v290_v20, %v4495_v12  ;;  %v270_v28 = vsel %vm269_vm2, %v4316_v55, %v266_v18  ;;  %v4125_v55 = vld [vmem:[#allocation2 + $0xb8] sm:$0xff]  ;;  %v4132_v18 = vld [vmem:[#allocation2 + $0xf0] sm:$0xff]  ;;  %v4131_v20 = vld [vmem:[#allocation2 + $0xe8] sm:$0xff]  ;;  %vm795_vm3 = vcmask 1046528  }
 0x277   :  { %v274_v27 = vmul.f32 0.5, %v273_v19  ;;  %339 = vmatpush.bf16.msra.mxu3 %v332_v21  ;;  %v311_v32 = vmul.f32 %v270_v28, %v4492_v9  ;;  %v4110_v9 = vld [vmem:[#allocation2 + $0x40] sm:$0xff]  ;;  %v4148_v19 = vld [vmem:[#allocation2 + $0x170] sm:$0xff]  ;;  %v4137_v28 = vld [vmem:[#allocation2 + $0x118] sm:$0xff] }
 0x278   :  { %v319_v0 = vmul.f32 %v4301_v1, %v313_v24  ;;  %512 = vmatpush.bf16.msrb.mxu1 %v4110_v9  ;;  %v4138_v21 = vld [vmem:[#allocation2 + $0x120] sm:$0xff]  ;;  %v4147_v24 = vld [vmem:[#allocation2 + $0x168] sm:$0xff] }
 0x279   :  { %v275_v29 = vsub.f32 1.5, %v274_v27  ;;  %v317_v12 = vmul.f32 %v4301_v1, %v311_v32  ;;  %v4136_v32 = vld [vmem:[#allocation2 + $0x110] sm:$0xff] }
 0x27a   :  { %v325_v30 = vadd.f32 %v4302_v7, %v319_v0  ;;  %v4146_v0 = vld [vmem:[#allocation2 + $0x160] sm:$0xff] }
 0x27b   :  { %v276_v33 = vmul.f32 %v4318_v10, %v275_v29  ;;  %v323_v38 = vadd.f32 %v4302_v7, %v317_v12 }
 0x27c   :  { %v329_v34 = vpack.c.bf16 %v326_v31, %v325_v30  ;;  %513 = vmatpush.bf16.msrb.mxu1 %v4109_v42  ;;  %v4534_v30 = vld [vmem:[#allocation5 + $0x3] ss:$0 sm:$0xff]  ;;  %v4129_v31 = vld [vmem:[#allocation2 + $0xd8] sm:$0xff] }
 0x27d   :  { %v280_v35 = vsel %vm279_vm7, %v4318_v10, %v276_v33  ;;  %v4150_v10 = vld [vmem:[#allocation2 + $0x180] sm:$0xff]  ;;  %v4145_v33 = vld [vmem:[#allocation2 + $0x158] sm:$0xff] }
 0x27e   :  { %340 = vmatpush.bf16.msra.mxu3 %v329_v34  ;;  %v312_v36 = vmul.f32 %v280_v35, %v4502_v16  ;;  %v4108_v16 = vld [vmem:[#allocation2 + $0x30] sm:$0xff]  ;;  %v4159_v35 = vld [vmem:[#allocation2 + $0x1c8] sm:$0xff] }
 0x280   :  { %v318_v37 = vmul.f32 %v4301_v1, %v312_v36  ;;  %514 = vmatpush.bf16.msrb.mxu1 %v4108_v16  ;;  %v4123_v1 = vld [vmem:[#allocation2 + $0xa8] sm:$0xff]  ;;  %v4128_v36 = vld [vmem:[#allocation2 + $0xd0] sm:$0xff]  ;;  %v4157_v16 = vld [vmem:[#allocation2 + $0x1b8] sm:$0xff] }
 0x282   :  { %v324_v39 = vadd.f32 %v4302_v7, %v318_v37  ;;  %v4142_v7 = vld [vmem:[#allocation2 + $0x140] sm:$0xff]  ;;  %v4144_v37 = vld [vmem:[#allocation2 + $0x150] sm:$0xff] }
 0x283   :  { %853 = vmatpush.bf16.msra.mxu0 %v4142_v7 }
 0x284   :  { %v328_v40 = vpack.c.bf16 %v324_v39, %v323_v38  ;;  %515 = vmatpush.bf16.msrb.mxu1 %v4107_v43  ;;  %v4167_v43 = vld [vmem:[#allocation2 + $0x208] sm:$0xff] }
 0x286   :  { %341 = vmatpush.bf16.msra.mxu3 %v328_v40  ;;  %448 = vmatmul.bf16.vlgmr.msrb.gmra.mxu0 %v328_v40  ;;  %v4158_v40 = vld [vmem:[#allocation2 + $0x1c0] sm:$0xff] }
 0x287   :  { %854 = vmatpush.bf16.msra.mxu0 %v4141_v11 }
 0x288   :  { %516 = vmatpush.bf16.msrb.mxu1 %v4106_v44 }
 0x289   :  { %3301 = vmatmul.msk.bf16.vlgmr.msra.gmra.mxu3 %vm158_vm4, %v4461_v22  ;;  %v4105_v22 = vld [vmem:[#allocation2 + $0x18] sm:$0xff] }
 0x28a   :  { %751 = vmatpush.bf16.msrb.mxu3 %v4135_v51  ;;  %v4155_v51 = vld [vmem:[#allocation2 + $0x1a8] sm:$0xff] }
 0x28b   :  { %855 = vmatpush.bf16.msra.mxu0 %v4140_v15 }
 0x28c   :  { %517 = vmatpush.bf16.msrb.mxu1 %v4105_v22  ;;  %v4156_v22 = vld [vmem:[#allocation2 + $0x1b0] sm:$0xff] }
 0x28e   :  { %752 = vmatpush.bf16.msrb.mxu3 %v4134_v3  ;;  %v4164_v3 = vld [vmem:[#allocation2 + $0x1f0] sm:$0xff] }
 0x290   :  { %518 = vmatpush.bf16.msrb.mxu1 %v4104_v45 }
 0x292   :  { %753 = vmatpush.bf16.msrb.mxu3 %v4133_v14 }
 0x294   :  { %959 = vmatpush.bf16.msra.mxu1 %v4151_v6  ;;  %v4173_v6 = vld [vmem:[#allocation2 + $0x238] sm:$0xff] }
 0x296   :  { %453 = vmatmul.bf16.gmra.mxu0 %v329_v34  ;;  %754 = vmatpush.bf16.msrb.mxu3 %v4132_v18 }
 0x298   :  { %960 = vmatpush.bf16.msra.mxu1 %v4150_v10 }
 0x299   :  { %3302 = vmatmul.msk.bf16.gmra.mxu3 %vm158_vm4, %v4468_v23 }
 0x29a   :  { %755 = vmatpush.bf16.msrb.mxu3 %v4131_v20  ;;  %v4181_v20 = vld [vmem:[#allocation2 + $0x278] sm:$0xff] }
 0x29c   :  { %961 = vmatpush.bf16.msra.mxu1 %v4149_v17 }
 0x29e   :  { %756 = vmatpush.bf16.msrb.mxu3 %v4130_v25 }
 0x2a0   :  { %962 = vmatpush.bf16.msra.mxu1 %v4148_v19  ;;  %v4172_v19 = vld [vmem:[#allocation2 + $0x230] sm:$0xff] }
 0x2a2   :  { %757 = vmatpush.bf16.msrb.mxu3 %v4129_v31 }
 0x2a4   :  { %963 = vmatpush.bf16.msra.mxu1 %v4147_v24 }
 0x2a6   :  { %458 = vmatmul.bf16.gmra.mxu0 %v330_v5  ;;  %v4139_v5 = vld [vmem:[#allocation2 + $0x128] sm:$0xff]  ;;  %758 = vmatpush.bf16.msrb.mxu3 %v4128_v36 }
 0x2a7   :  { %856 = vmatpush.bf16.msra.mxu0 %v4139_v5  ;;  %v4171_v36 = vld [vmem:[#allocation2 + $0x228] sm:$0xff] }
 0x2a8   :  { %964 = vmatpush.bf16.msra.mxu1 %v4146_v0 }
 0x2a9   :  { %3303 = vmatmul.msk.bf16.gmra.mxu3 %vm158_vm4, %v4475_v26  ;;  %v4127_v26 = vld [vmem:[#allocation2 + $0xc8] sm:$0xff]  ;;  %vm677_vm4 = vsmask.f32 7424 }
 0x2aa   :  { %632 = vmatpush.bf16.msra.mxu2 %v4127_v26  ;;  %1167 = vmatpush.bf16.msra.mxu3 %v4167_v43  ;;  %v4166_v26 = vld [vmem:[#allocation2 + $0x200] sm:$0xff] }
 0x2ab   :  { %857 = vmatpush.bf16.msra.mxu0 %v4138_v21  ;;  %v4162_v43 = vld [vmem:[#allocation2 + $0x1e0] sm:$0xff] }
 0x2ac   :  { %965 = vmatpush.bf16.msra.mxu1 %v4145_v33 }
 0x2ae   :  { %633 = vmatpush.bf16.msra.mxu2 %v4126_v52  ;;  %v4175_v52 = vld [vmem:[#allocation2 + $0x248] sm:$0xff]  ;;  %1168 = vmatpush.bf16.msra.mxu3 %v4166_v26 }
 0x2af   :  { %858 = vmatpush.bf16.msra.mxu0 %v4137_v28 }
 0x2b0   :  { %966 = vmatpush.bf16.msra.mxu1 %v4144_v37 }
 0x2b2   :  { %634 = vmatpush.bf16.msra.mxu2 %v4125_v55  ;;  %v4183_v55 = vld [vmem:[#allocation2 + $0x288] sm:$0xff] }
 0x2b3   :  { %859 = vmatpush.bf16.msra.mxu0 %v4136_v32 }
 0x2b6   :  { %635 = vmatpush.bf16.msra.mxu2 %v4124_v61 }
 0x2b7   :  { %1268 = vmatpush.bf16.msrb.mxu0 %v4175_v52  ;;  %v4177_v52 = vld [vmem:[#allocation2 + $0x258] sm:$0xff] }
 0x2ba   :  { %636 = vmatpush.bf16.msra.mxu2 %v4123_v1  ;;  %v4153_v1 = vld [vmem:[#allocation2 + $0x198] sm:$0xff] }
 0x2be   :  { %637 = vmatpush.bf16.msra.mxu2 %v4122_v4 }
 0x2c2   :  { %638 = vmatpush.bf16.msra.mxu2 %v4121_v8 }
 0x2c6   :  { %639 = vmatpush.bf16.msra.mxu2 %v4120_v13 }
 0x2ca   :  { %1060 = vmatpush.bf16.msrb.mxu2 %v4159_v35 }
 0x2ce   :  { %1061 = vmatpush.bf16.msrb.mxu2 %v4158_v40 }
 0x2d2   :  { %1062 = vmatpush.bf16.msrb.mxu2 %v4157_v16  ;;  %v4179_v16 = vld [vmem:[#allocation2 + $0x268] sm:$0xff] }
 0x2d6   :  { %1063 = vmatpush.bf16.msrb.mxu2 %v4156_v22  ;;  %v4178_v22 = vld [vmem:[#allocation2 + $0x260] sm:$0xff] }
 0x2da   :  { %1064 = vmatpush.bf16.msrb.mxu2 %v4155_v51  ;;  %v4168_v51 = vld [vmem:[#allocation2 + $0x210] sm:$0xff] }
 0x303   :  { %v4523_v46 = vpop.f32.mrf.mxu0 }
 0x30b   :  { %v4525_v47 = vpop.f32.mrf.mxu0 }
 0x30c   :  { %v343_v48 = vpop.f32.mrf.mxu3 }
 0x313   :  { %v4527_v23 = vpop.f32.mrf.mxu0 }
 0x314   :  { %v345_v49 = vpop.f32.mrf.mxu3 }
 0x315   :  { %v357_v50 = vpack.c.bf16 %v345_v49, %v343_v48 }
 0x317   :  { %519 = vmatmul.bf16.vlgmr.msrb.gmra.mxu1 %v357_v50 }
 0x318   :  { %1375 = vmatpush.bf16.msrb.mxu1 %v4183_v55  ;;  %v4160_v55 = vld [vmem:[#allocation2 + $0x1d0] sm:$0xff] }
 0x31b   :  { %v4529_v53 = vpop.f32.mrf.mxu0 }
 0x31c   :  { %v348_v54 = vpop.f32.mrf.mxu3  ;;  %1376 = vmatpush.bf16.msrb.mxu1 %v4182_v2 }
 0x320   :  { %1377 = vmatpush.bf16.msrb.mxu1 %v4181_v20 }
 0x323   :  { %v4531_v56 = vpop.f32.mrf.mxu0 }
 0x324   :  { %v350_v57 = vpop.f32.mrf.mxu3 }
 0x325   :  { %v358_v58 = vpack.c.bf16 %v350_v57, %v348_v54 }
 0x327   :  { %524 = vmatmul.bf16.gmra.mxu1 %v358_v58 }
 0x32b   :  { %v461_v59 = vpop.f32.mrf.mxu0 }
 0x32c   :  { %v353_v60 = vpop.f32.mrf.mxu3  ;;  %v4154_v59 = vld [vmem:[#allocation2 + $0x1a0] sm:$0xff] }
 0x32d   :  { %v359_v62 = vpack.c.bf16 %v353_v60, %v353_v60  ;;  %1065 = vmatpush.bf16.msrb.mxu2 %v4154_v59 }
 0x331   :  { %1066 = vmatpush.bf16.msrb.mxu2 %v4153_v1 }
 0x334   :  { %v355_v63 = vpop.f32.mrf.mxu3 }
 0x337   :  { %529 = vmatmul.bf16.gmra.mxu1 %v359_v62  ;;  %v4174_v62 = vld [vmem:[#allocation2 + $0x240] sm:$0xff] }
 0x338   :  { %1269 = vmatpush.bf16.msrb.mxu0 %v4174_v62 }
 0x33c   :  { %1270 = vmatpush.bf16.msrb.mxu0 %v4173_v6 }
 0x340   :  { %1271 = vmatpush.bf16.msrb.mxu0 %v4172_v19 }
 0x344   :  { %1272 = vmatpush.bf16.msrb.mxu0 %v4171_v36 }
 0x394   :  { %v520_v27 = vpop.f32.mrf.mxu1 }
 0x395   :  { %v521_v29 = vadd.f32 %v520_v27, %v4523_v46  ;;  %v4163_v27 = vld [vmem:[#allocation2 + $0x1e8] sm:$0xff] }
 0x397   :  { %v536_v34 = vadd.f32 %v4534_v30, %v521_v29 }
 0x399   :  { %v541_v38 = vmax.f32 %v536_v34, 0.0 }
 0x39b   :  { %v546_v9 = vpack.c.bf16 %v541_v38, %v541_v38 }
 0x39c   :  { %v522_v12 = vpop.f32.mrf.mxu1 }
 0x39d   :  { %v523_v39 = vadd.f32 %v522_v12, %v4525_v47  ;;  %v573_v46 = vunpack.c.l.b16 %v546_v9  ;;  %v4180_v12 = vld [vmem:[#allocation2 + $0x270] sm:$0xff] }
 0x39e   :  { %1378 = vmatpush.bf16.msrb.mxu1 %v4180_v12 }
 0x39f   :  { %v537_v41 = vadd.f32 %v4534_v30, %v523_v39 }
 0x3a1   :  { %v542_v42 = vmax.f32 %v537_v41, 0.0 }
 0x3a2   :  { %1379 = vmatpush.bf16.msrb.mxu1 %v4179_v16 }
 0x3a3   :  { %v547_v44 = vpack.c.bf16 %v542_v42, %v542_v42  ;;  %v4170_v42 = vld [vmem:[#allocation2 + $0x220] sm:$0xff] }
 0x3a4   :  { %v525_v45 = vpop.f32.mrf.mxu1  ;;  %1273 = vmatpush.bf16.msrb.mxu0 %v4170_v42  ;;  %v4304_v42 = vld [vmem:[#allocation5 + $0x4] ss:$0 sm:$0xff] }
 0x3a5   :  { %v574_v48 = vunpack.c.l.b16 %v547_v44  ;;  %v526_v49 = vadd.f32 %v525_v45, %v4527_v23  ;;  %v4165_v23 = vld [vmem:[#allocation2 + $0x1f8] sm:$0xff] }
 0x3a6   :  { %1169 = vmatpush.bf16.msra.mxu3 %v4165_v23  ;;  %v4169_v44 = vld [vmem:[#allocation2 + $0x218] sm:$0xff]  ;;  %1380 = vmatpush.bf16.msrb.mxu1 %v4178_v22  ;;  %v4176_v23 = vld [vmem:[#allocation2 + $0x250] sm:$0xff] }
 0x3a7   :  { %v4540_v50 = vpack.c.b16 %v574_v48, %v573_v46  ;;  %v538_v47 = vadd.f32 %v4534_v30, %v526_v49  ;;  %v4161_v45 = vld [vmem:[#allocation2 + $0x1d8] sm:$0xff]  ;;  %v4184_v22 = vld [vmem:[#allocation2 + $0x290] sm:$0xff] }
 0x3a8   :  { %1274 = vmatpush.bf16.msrb.mxu0 %v4169_v44 }
 0x3a9   :  { %640 = vmatmul.bf16.vlgmr.msra.gmra.mxu2 %v4540_v50  ;;  %v543_v57 = vmax.f32 %v538_v47, 0.0  ;;  %v4547_v4 = vshll.u32 %v4540_v50, 16  ;;  %v4551_v14 = vshrl.u32 %v4540_v50, 16  ;;  %v796_v5 = vrot.slane %v4540_v50, 1 }
 0x3aa   :  { %1170 = vmatpush.bf16.msra.mxu3 %v4164_v3  ;;  %1381 = vmatpush.bf16.msrb.mxu1 %v4177_v52  ;;  %v4185_v52 = vld [vmem:[#allocation2 + $0x298] sm:$0xff] }
 0x3ab   :  { %v548_v63 = vpack.c.bf16 %v543_v57, %v543_v57  ;;  %v683_v15 = vrot.slane %v4547_v4, 1  ;;  %v897_v0 = vrot.slane %v4551_v14, 1  ;;  %v898_v29 = vrot.slane %v4547_v4, 2 }
 0x3ac   :  { %v527_v54 = vpop.f32.mrf.mxu1  ;;  %1275 = vmatpush.bf16.msrb.mxu0 %v4168_v51 }
 0x3ad   :  { %v528_v58 = vadd.f32 %v527_v54, %v4529_v53  ;;  %v4152_v53 = vld [vmem:[#allocation2 + $0x190] sm:$0xff]  ;;  %v575_v10 = vunpack.c.l.b16 %v548_v63  ;;  %v684_v28 = vor.u32 %v683_v15, %v4551_v14  ;;  %v899_v39 = vor.u32 %v898_v29, %v897_v0 }
 0x3ae   :  { %1067 = vmatpush.bf16.msrb.mxu2 %v4152_v53  ;;  %1171 = vmatpush.bf16.msra.mxu3 %v4163_v27  ;;  %v1105_v53 = vrot.slane %v4551_v14, 2  ;;  %v1212_v15 = vrot.slane %v4540_v50, 3 }
 0x3af   :  { %v539_v60 = vadd.f32 %v4534_v30, %v528_v58  ;;  %1382 = vmatpush.bf16.msrb.mxu1 %v4176_v23 }
 0x3b1   :  { %v544_v61 = vmax.f32 %v539_v60, 0.0 }
 0x3b2   :  { %1172 = vmatpush.bf16.msra.mxu3 %v4162_v43  ;;  %1446 = vmatpush.bf16.msra.mxu2 %v4184_v22 }
 0x3b3   :  { %v549_v7 = vpack.c.bf16 %v544_v61, %v544_v61  ;;  %v1004_v61 = vrot.slane %v4540_v50, 2 }
 0x3b4   :  { %v530_v8 = vpop.f32.mrf.mxu1 }
 0x3b5   :  { %v576_v11 = vunpack.c.l.b16 %v549_v7  ;;  %v531_v13 = vadd.f32 %v530_v8, %v4531_v56  ;;  %v1106_v8 = vrot.slane %v4547_v4, 3 }
 0x3b6   :  { %1173 = vmatpush.bf16.msra.mxu3 %v4161_v45 }
 0x3b7   :  { %v4554_v17 = vpack.c.b16 %v576_v11, %v575_v10  ;;  %v540_v18 = vadd.f32 %v4534_v30, %v531_v13  ;;  %v1107_v20 = vor.u32 %v1106_v8, %v1105_v53 }
 0x3b9   :  { %v545_v21 = vmax.f32 %v540_v18, 0.0  ;;  %645 = vmatmul.bf16.gmra.mxu2 %v4554_v17  ;;  %v797_v56 = vrot.slane %v4554_v17, 1  ;;  %v4561_v24 = vshll.u32 %v4554_v17, 16  ;;  %v4564_v25 = vshrl.u32 %v4554_v17, 16 }
 0x3ba   :  { %1174 = vmatpush.bf16.msra.mxu3 %v4160_v55  ;;  %v1005_v63 = vrot.slane %v4554_v17, 2  ;;  %v1213_v7 = vrot.slane %v4554_v17, 3  ;;  %v1314_v17 = vrot.slane %v4547_v4, 4 }
 0x3bb   :  { %v550_v30 = vpack.c.bf16 %v545_v21, %v545_v21  ;;  %v798_v31 = vsel %vm795_vm3, %v796_v5, %v797_v56  ;;  %v688_v32 = vrot.slane %v4561_v24, 1  ;;  %v900_v33 = vrot.slane %v4564_v25, 1 }
 0x3bc   :  { %860 = vmatmul.bf16.vlgmr.msra.gmra.mxu0 %v798_v31  ;;  %v901_v34 = vrot.slane %v4561_v24, 2  ;;  %v532_v35 = vpop.f32.mrf.mxu1  ;;  %v1006_v1 = vsel %vm1003_vm9, %v1004_v61, %v1005_v63  ;;  %v1108_v3 = vrot.slane %v4564_v25, 2  ;;  %v1109_v6 = vrot.slane %v4561_v24, 3 }
 0x3bd   :  { %v577_v37 = vunpack.c.l.b16 %v550_v30  ;;  %v689_v38 = vsel %vm677_vm4, %v684_v28, %v688_v32  ;;  %v692_v58 = vor.u32 %v4564_v25, %v688_v32  ;;  %v1316_v11 = vrot.slane %v4564_v25, 3 }
 0x3be   :  { %759 = vmatmul.bf16.vlgmr.msrb.gmra.mxu3 %v689_v38  ;;  %v902_v40 = vor.u32 %v901_v34, %v900_v33  ;;  %v1317_v13 = vrot.slane %v4561_v24, 4  ;;  %v1110_v18 = vor.u32 %v1109_v6, %v1108_v3  ;;  %v1313_v5 = vrot.slane %v4551_v14, 3 }
 0x3bf   :  { %v4574_v41 = vpack.c.b16 %v577_v37, %v577_v37  ;;  %v1214_v19 = vsel %vm1211_vm10, %v1212_v15, %v1213_v7  ;;  %1497 = vmatpush.bf16.msrb.mxu3 %v4185_v52 }
 0x3c0   :  { %v903_v9 = vsel %vm896_vm8, %v899_v39, %v902_v40  ;;  %v1318_v21 = vor.u32 %v1317_v13, %v1316_v11  ;;  %v1315_v25 = vor.u32 %v1314_v17, %v1313_v5 }
 0x3c1   :  { %967 = vmatmul.bf16.vlgmr.msra.gmra.mxu1 %v903_v9  ;;  %v4578_v46 = vshll.u32 %v4574_v41, 16  ;;  %v4581_v48 = vshrl.u32 %v4574_v41, 16  ;;  %v799_v49 = vrot.slane %v4574_v41, 1  ;;  %v1007_v2 = vrot.slane %v4574_v41, 2 }
 0x3c2   :  { %v1319_v24 = vsel %vm1312_vm12, %v1315_v25, %v1318_v21  ;;  %v1215_v14 = vrot.slane %v4574_v41, 3 }
 0x3c3   :  { %v904_v47 = vrot.slane %v4581_v48, 1  ;;  %v905_v26 = vrot.slane %v4578_v46, 2  ;;  %v696_v54 = vrot.slane %v4578_v46, 1  ;;  %v800_v57 = vsel %vm795_vm3, %v797_v56, %v799_v49 }
 0x3c4   :  { %v1008_v10 = vsel %vm1003_vm9, %v1005_v63, %v1007_v2  ;;  %v1111_v56 = vsel %vm1104_vm11, %v1107_v20, %v1110_v18  ;;  %v1112_v50 = vrot.slane %v4581_v48, 2  ;;  %v1113_v27 = vrot.slane %v4578_v46, 3 }
 0x3c5   :  { %v906_v59 = vor.u32 %v905_v26, %v904_v47  ;;  %v697_v60 = vsel %vm677_vm4, %v692_v58, %v696_v54  ;;  %v1320_v4 = vrot.slane %v4581_v48, 3  ;;  %v1321_v28 = vrot.slane %v4578_v46, 4 }
 0x3c6   :  { %v1114_v0 = vor.u32 %v1113_v27, %v1112_v50  ;;  %v1216_v29 = vsel %vm1211_vm10, %v1213_v7, %v1215_v14 }
 0x3c7   :  { %v907_v62 = vsel %vm896_vm8, %v902_v40, %v906_v59  ;;  %v1322_v30 = vor.u32 %v1321_v28, %v1320_v4 }
 0x3c8   :  { %v1115_v31 = vsel %vm1104_vm11, %v1110_v18, %v1114_v0 }
 0x3c9   :  { %650 = vmatmul.bf16.gmra.mxu2 %v4574_v41  ;;  %v1323_v32 = vsel %vm1312_vm12, %v1318_v21, %v1322_v30 }
 0x3cc   :  { %865 = vmatmul.bf16.gmra.mxu0 %v800_v57 }
 0x3ce   :  { %764 = vmatmul.bf16.gmra.mxu3 %v697_v60 }
 0x3d1   :  { %972 = vmatmul.bf16.gmra.mxu1 %v907_v62 }
 0x3d9   :  { %1068 = vmatmul.bf16.vlgmr.msrb.gmra.mxu2 %v1006_v1 }
 0x3dc   :  { %870 = vmatmul.bf16.gmra.mxu0 %v799_v49 }
 0x3de   :  { %769 = vmatmul.bf16.gmra.mxu3 %v4581_v48 }
 0x3e1   :  { %977 = vmatmul.bf16.gmra.mxu1 %v904_v47 }
 0x3e9   :  { %1073 = vmatmul.bf16.gmra.mxu2 %v1008_v10 }
 0x3ec   :  { %1276 = vmatmul.bf16.vlgmr.msrb.gmra.mxu0 %v1214_v19 }
 0x3ee   :  { %1175 = vmatmul.bf16.vlgmr.msra.gmra.mxu3 %v1111_v56 }
 0x3f1   :  { %1383 = vmatmul.bf16.vlgmr.msrb.gmra.mxu1 %v1319_v24 }
 0x3f9   :  { %1078 = vmatmul.bf16.gmra.mxu2 %v1007_v2 }
 0x3fc   :  { %1281 = vmatmul.bf16.gmra.mxu0 %v1216_v29 }
 0x3fe   :  { %1180 = vmatmul.bf16.gmra.mxu3 %v1115_v31 }
 0x401   :  { %1388 = vmatmul.bf16.gmra.mxu1 %v1323_v32 }
 0x40c   :  { %1286 = vmatmul.bf16.gmra.mxu0 %v1215_v14 }
 0x40e   :  { %1185 = vmatmul.bf16.gmra.mxu3 %v1112_v50 }
 0x411   :  { %1393 = vmatmul.bf16.gmra.mxu1 %v1320_v4  ;;  %v4188_v4 = vld [vmem:[#allocation2 + $0x2b0] sm:$0xff] }
 0x412   :  { %1621 = vmatpush.bf16.msra.mxu0 %v4188_v4 }
 0x42c   :  { %v641_v33 = vpop.f32.mrf.mxu2 }
 0x42d   :  { %v656_v59 = vadd.f32 %v4304_v42, %v641_v33 }
 0x434   :  { %v643_v34 = vpop.f32.mrf.mxu2 }
 0x435   :  { %v657_v6 = vadd.f32 %v4304_v42, %v643_v34  ;;  %v4189_v34 = vld [vmem:[#allocation2 + $0x2b8] sm:$0xff] }
 0x436   :  { %1665 = vmatpush.bf16.msra.mxu1 %v4189_v34 }
 0x439   :  { %v861_v35 = vpop.f32.mrf.mxu0 }
 0x43c   :  { %v646_v36 = vpop.f32.mrf.mxu2 }
 0x43d   :  { %v658_v17 = vadd.f32 %v4304_v42, %v646_v36 }
 0x43e   :  { %v968_v12 = vpop.f32.mrf.mxu1 }
 0x441   :  { %v760_v37 = vpop.f32.mrf.mxu3  ;;  %v863_v38 = vpop.f32.mrf.mxu0 }
 0x442   :  { %v774_v62 = vadd.f32 %v760_v37, %v656_v59 }
 0x444   :  { %v648_v39 = vpop.f32.mrf.mxu2  ;;  %v875_v3 = vadd.f32 %v861_v35, %v774_v62 }
 0x445   :  { %v659_v29 = vadd.f32 %v4304_v42, %v648_v39  ;;  %v4187_v39 = vld [vmem:[#allocation2 + $0x2a8] sm:$0xff] }
 0x446   :  { %v970_v40 = vpop.f32.mrf.mxu1  ;;  %v982_v8 = vadd.f32 %v968_v12, %v875_v3  ;;  %1581 = vmatpush.bf16.msra.mxu3 %v4187_v39 }
 0x449   :  { %v762_v41 = vpop.f32.mrf.mxu3  ;;  %v866_v9 = vpop.f32.mrf.mxu0 }
 0x44a   :  { %v775_v53 = vadd.f32 %v762_v41, %v657_v6 }
 0x44c   :  { %v651_v16 = vpop.f32.mrf.mxu2  ;;  %v876_v18 = vadd.f32 %v863_v38, %v775_v53 }
 0x44d   :  { %v660_v43 = vadd.f32 %v4304_v42, %v651_v16 }
 0x44e   :  { %v973_v44 = vpop.f32.mrf.mxu1  ;;  %v983_v56 = vadd.f32 %v970_v40, %v876_v18 }
 0x451   :  { %v765_v45 = vpop.f32.mrf.mxu3  ;;  %v868_v46 = vpop.f32.mrf.mxu0 }
 0x452   :  { %v776_v21 = vadd.f32 %v765_v45, %v658_v17 }
 0x454   :  { %v653_v48 = vpop.f32.mrf.mxu2  ;;  %v877_v28 = vadd.f32 %v866_v9, %v776_v21 }
 0x455   :  { %v4186_v48 = vld [vmem:[#allocation2 + $0x2a0] sm:$0xff] }
 0x456   :  { %v4619_v49 = vpop.f32.mrf.mxu1  ;;  %v984_v36 = vadd.f32 %v973_v44, %v877_v28  ;;  %1537 = vmatpush.bf16.msrb.mxu2 %v4186_v48 }
 0x459   :  { %v767_v47 = vpop.f32.mrf.mxu3  ;;  %v871_v26 = vpop.f32.mrf.mxu0 }
 0x45a   :  { %v777_v35 = vadd.f32 %v767_v47, %v659_v29 }
 0x45c   :  { %v1069_v51 = vpop.f32.mrf.mxu2  ;;  %v878_v22 = vadd.f32 %v868_v46, %v777_v35 }
 0x45d   :  { %v1083_v11 = vadd.f32 %v1069_v51, %v982_v8 }
 0x45e   :  { %v978_v54 = vpop.f32.mrf.mxu1  ;;  %v985_v44 = vadd.f32 %v4619_v49, %v878_v22 }
 0x461   :  { %v770_v55 = vpop.f32.mrf.mxu3  ;;  %v873_v57 = vpop.f32.mrf.mxu0 }
 0x462   :  { %v778_v58 = vadd.f32 %v770_v55, %v660_v43 }
 0x464   :  { %v879_v23 = vadd.f32 %v871_v26, %v778_v58  ;;  %v1071_v60 = vpop.f32.mrf.mxu2 }
 0x465   :  { %v1084_v24 = vadd.f32 %v1071_v60, %v983_v56 }
 0x466   :  { %v980_v63 = vpop.f32.mrf.mxu1  ;;  %v986_v61 = vadd.f32 %v978_v54, %v879_v23 }
 0x469   :  { %v772_v1 = vpop.f32.mrf.mxu3  ;;  %v1277_v2 = vpop.f32.mrf.mxu0 }
 0x46c   :  { %v1074_v7 = vpop.f32.mrf.mxu2 }
 0x46d   :  { %v1085_v38 = vadd.f32 %v1074_v7, %v984_v36 }
 0x46e   :  { %v1384_v10 = vpop.f32.mrf.mxu1 }
 0x471   :  { %v1176_v13 = vpop.f32.mrf.mxu3  ;;  %v1279_v15 = vpop.f32.mrf.mxu0 }
 0x472   :  { %v1190_v5 = vadd.f32 %v1176_v13, %v1083_v11 }
 0x474   :  { %v1291_v19 = vadd.f32 %v1277_v2, %v1190_v5  ;;  %v1076_v20 = vpop.f32.mrf.mxu2 }
 0x475   :  { %v1086_v55 = vadd.f32 %v1076_v20, %v985_v44 }
 0x476   :  { %v1386_v25 = vpop.f32.mrf.mxu1  ;;  %v1398_v50 = vadd.f32 %v1384_v10, %v1291_v19 }
 0x478   :  { %v1403_v30 = vmax.f32 %v1398_v50, 0.0 }
 0x479   :  { %v1178_v27 = vpop.f32.mrf.mxu3  ;;  %v1282_v14 = vpop.f32.mrf.mxu0 }
 0x47a   :  { %v1191_v0 = vadd.f32 %v1178_v27, %v1084_v24  ;;  %v1408_v40 = vpack.c.bf16 %v1403_v30, %v1403_v30 }
 0x47c   :  { %v1292_v31 = vadd.f32 %v1279_v15, %v1191_v0  ;;  %v1079_v32 = vpop.f32.mrf.mxu2  ;;  %v1420_v42 = vunpack.c.l.b16 %v1408_v40 }
 0x47d   :  { %v1087_v33 = vadd.f32 %v1079_v32, %v986_v61 }
 0x47e   :  { %v1399_v12 = vadd.f32 %v1386_v25, %v1292_v31  ;;  %v1389_v37 = vpop.f32.mrf.mxu1 }
 0x480   :  { %v1404_v41 = vmax.f32 %v1399_v12, 0.0 }
 0x481   :  { %v1181_v16 = vpop.f32.mrf.mxu3  ;;  %v1284_v43 = vpop.f32.mrf.mxu0 }
 0x482   :  { %v1409_v9 = vpack.c.bf16 %v1404_v41, %v1404_v41  ;;  %v1192_v45 = vadd.f32 %v1181_v16, %v1085_v38 }
 0x484   :  { %v1421_v26 = vunpack.c.l.b16 %v1409_v9  ;;  %v1293_v51 = vadd.f32 %v1282_v14, %v1192_v45  ;;  %v1081_v52 = vpop.f32.mrf.mxu2 }
 0x486   :  { %v1424_v47 = vpack.c.b16 %v1421_v26, %v1420_v42  ;;  %v1391_v54 = vpop.f32.mrf.mxu1  ;;  %v1400_v57 = vadd.f32 %v1389_v37, %v1293_v51  ;;  %v4190_v42 = vld [vmem:[#allocation2 + $0x2c0] sm:$0xff]  ;;  %v4191_v26 = vld [vmem:[#allocation2 + $0x2c8] sm:$0xff] }
 0x488   :  { %3628 = vmatmul.msk.bf16.vlgmr.msra.gmra.mxu2 %vm1432_vm13, %v1424_v47  ;;  %v1465_v46 = vshrl.u32 %v1424_v47, 16  ;;  %v1467_v58 = vshll.u32 %v1424_v47, 16  ;;  %v1405_v63 = vmax.f32 %v1400_v57, 0.0  ;;  %v1599_v25 = vrot.slane %v1424_v47, 2 }
 0x489   :  { %v1183_v59 = vpop.f32.mrf.mxu3  ;;  %v1287_v23 = vpop.f32.mrf.mxu0  ;;  %v1515_v24 = vrot.slane %v1424_v47, 1  ;;  %v1683_v14 = vrot.slane %v1424_v47, 3  ;;  %1705 = vmatpush.bf16.msra.mxu2 %v4190_v42 }
 0x48a   :  { %v1193_v60 = vadd.f32 %v1183_v59, %v1086_v55  ;;  %v1726_v62 = vrot.slane %v1465_v46, 3  ;;  %v1727_v1 = vrot.slane %v1467_v58, 4  ;;  %v1410_v7 = vpack.c.bf16 %v1405_v63, %v1405_v63 }
 0x48b   :  { %v1469_v5 = vrot.slane %v1467_v58, 1  ;;  %v1639_v17 = vrot.slane %v1465_v46, 2  ;;  %v1640_v19 = vrot.slane %v1467_v58, 3  ;;  %v1555_v50 = vrot.slane %v1465_v46, 1 }
 0x48c   :  { %v1294_v61 = vadd.f32 %v1284_v43, %v1193_v60  ;;  %v1728_v6 = vor.u32 %v1727_v1, %v1726_v62  ;;  %v1422_v13 = vunpack.c.l.b16 %v1410_v7  ;;  %v1556_v27 = vrot.slane %v1467_v58, 2 }
 0x48d   :  { %v1470_v31 = vor.u32 %v1469_v5, %v1465_v46  ;;  %v1641_v32 = vor.u32 %v1640_v19, %v1639_v17 }
 0x48e   :  { %v1401_v2 = vadd.f32 %v1391_v54, %v1294_v61  ;;  %v1394_v3 = vpop.f32.mrf.mxu1  ;;  %v1557_v9 = vor.u32 %v1556_v27, %v1555_v50 }
 0x490   :  { %v1406_v49 = vmax.f32 %v1401_v2, 0.0 }
 0x491   :  { %v1186_v53 = vpop.f32.mrf.mxu3  ;;  %v1289_v8 = vpop.f32.mrf.mxu0 }
 0x492   :  { %v1411_v10 = vpack.c.bf16 %v1406_v49, %v1406_v49  ;;  %v1194_v11 = vadd.f32 %v1186_v53, %v1087_v33 }
 0x494   :  { %v1423_v15 = vunpack.c.l.b16 %v1411_v10  ;;  %v1295_v18 = vadd.f32 %v1287_v23, %v1194_v11  ;;  %v4197_v10 = vld [vmem:[#allocation2 + $0x2f8] sm:$0xff] }
 0x495   :  { %v4193_v11 = vld [vmem:[#allocation2 + $0x2d8] sm:$0xff] }
 0x496   :  { %v1425_v20 = vpack.c.b16 %v1423_v15, %v1422_v13  ;;  %v1402_v21 = vadd.f32 %v1394_v3, %v1295_v18  ;;  %v1396_v56 = vpop.f32.mrf.mxu1  ;;  %v4199_v13 = vld [vmem:[#allocation2 + $0x308] sm:$0xff]  ;;  %1819 = vmatpush.bf16.msrb.mxu0 %v4193_v11 }
 0x497   :  { %v4305_v18 = vld [vmem:[#allocation5 + $0x5] ss:$0 sm:$0xff] }
 0x498   :  { %v1407_v4 = vmax.f32 %v1402_v21, 0.0  ;;  %3629 = vmatmul.msk.bf16.gmra.mxu2 %vm1432_vm13, %v1425_v20  ;;  %v1600_v28 = vrot.slane %v1425_v20, 2  ;;  %v1471_v0 = vshll.u32 %v1425_v20, 16  ;;  %v1475_v29 = vshrl.u32 %v1425_v20, 16  ;;  %v4195_v56 = vld [vmem:[#allocation2 + $0x2e8] sm:$0xff] }
 0x499   :  { %v1188_v30 = vpop.f32.mrf.mxu3  ;;  %v1516_v33 = vrot.slane %v1425_v20, 1  ;;  %v1684_v34 = vrot.slane %v1425_v20, 3  ;;  %v4192_v20 = vld [vmem:[#allocation2 + $0x2d0] sm:$0xff]  ;;  %1876 = vmatpush.bf16.msrb.mxu1 %v4195_v56 }
 0x49a   :  { %v1412_v35 = vpack.c.bf16 %v1407_v4, %v1407_v4  ;;  %v1601_v36 = vsel %vm1003_vm9, %v1599_v25, %v1600_v28  ;;  %v1473_v12 = vrot.slane %v1471_v0, 1  ;;  %v1642_v37 = vrot.slane %v1475_v29, 2  ;;  %1820 = vmatpush.bf16.msrb.mxu0 %v4192_v20 }
 0x49b   :  { %3652 = vmatmul.msk.bf16.vlgmr.msra.gmra.mxu0 %vm1432_vm13, %v1601_v36  ;;  %v1643_v38 = vrot.slane %v1471_v0, 3  ;;  %v1517_v40 = vsel %vm795_vm3, %v1515_v24, %v1516_v33  ;;  %v1558_v41 = vrot.slane %v1475_v29, 1  ;;  %v1559_v16 = vrot.slane %v1471_v0, 2 }
 0x49c   :  { %v1724_v43 = vunpack.c.l.b16 %v1412_v35  ;;  %v1474_v22 = vsel %vm677_vm4, %v1470_v31, %v1473_v12  ;;  %v1685_v45 = vsel %vm1211_vm10, %v1683_v14, %v1684_v34  ;;  %v1729_v51 = vrot.slane %v1475_v29, 3  ;;  %v4196_v31 = vld [vmem:[#allocation2 + $0x2f0] sm:$0xff]  ;;  %v4194_v35 = vld [vmem:[#allocation2 + $0x2e0] sm:$0xff] }
 0x49d   :  { %3634 = vmatmul.msk.bf16.vlgmr.msrb.gmra.mxu3 %vm1432_vm13, %v1474_v22  ;;  %v1644_v48 = vor.u32 %v1643_v38, %v1642_v37  ;;  %v1560_v39 = vor.u32 %v1559_v16, %v1558_v41  ;;  %v1730_v52 = vrot.slane %v1471_v0, 4  ;;  %v1477_v23 = vor.u32 %v1475_v29, %v1473_v12  ;;  %1877 = vmatpush.bf16.msrb.mxu1 %v4194_v35 }
 0x49e   :  { %v1725_v44 = vpack.c.b16 %v1724_v43, %v1724_v43  ;;  %1757 = vmatpush.bf16.msrb.mxu3 %v4191_v26  ;;  %v4205_v26 = vld [vmem:[#allocation2 + $0x338] sm:$0xff] }
 0x49f   :  { %v1645_v47 = vsel %vm1104_vm11, %v1641_v32, %v1644_v48  ;;  %v1561_v54 = vsel %vm896_vm8, %v1557_v9, %v1560_v39  ;;  %v1731_v55 = vor.u32 %v1730_v52, %v1729_v51  ;;  %v4198_v32 = vld [vmem:[#allocation2 + $0x300] sm:$0xff]  ;;  %v4201_v51 = vld [vmem:[#allocation2 + $0x318] sm:$0xff]  ;;  %v4207_v52 = vld [vmem:[#allocation2 + $0x348] sm:$0xff] }
 0x4a0   :  { %v1734_v57 = vshll.u32 %v1725_v44, 16  ;;  %3658 = vmatmul.msk.bf16.vlgmr.msra.gmra.mxu1 %vm1432_vm13, %v1645_v47  ;;  %2018 = vmatpush.bf16.msra.mxu0 %v4201_v51 }
 0x4a1   :  { %v1732_v46 = vsel %vm1312_vm12, %v1728_v6, %v1731_v55 }
 0x4a2   :  { %v1736_v58 = vrot.slane %v1734_v57, 4 }
 0x4a4   :  { %v1737_v59 = vsel %vm1312_vm12, %v1731_v55, %v1736_v58 }
 0x4a8   :  { %3640 = vmatmul.msk.bf16.vlgmr.msrb.gmra.mxu2 %vm1432_vm13, %v1517_v40 }
 0x4a9   :  { %1922 = vmatpush.bf16.msrb.mxu2 %v4197_v10 }
 0x4ab   :  { %3653 = vmatmul.msk.bf16.gmra.mxu0 %vm1432_vm13, %v1600_v28 }
 0x4ad   :  { %3635 = vmatmul.msk.bf16.gmra.mxu3 %vm1432_vm13, %v1477_v23  ;;  %1923 = vmatpush.bf16.msrb.mxu2 %v4196_v31 }
 0x4b0   :  { %3659 = vmatmul.msk.bf16.gmra.mxu1 %vm1432_vm13, %v1644_v48 }
 0x4b8   :  { %3641 = vmatmul.msk.bf16.gmra.mxu2 %vm1432_vm13, %v1516_v33 }
 0x4bd   :  { %3646 = vmatmul.msk.bf16.vlgmr.msra.gmra.mxu3 %vm1432_vm13, %v1561_v54  ;;  %v4203_v54 = vld [vmem:[#allocation2 + $0x328] sm:$0xff] }
 0x4be   :  { %1972 = vmatpush.bf16.msra.mxu3 %v4199_v13  ;;  %2068 = vmatpush.bf16.msra.mxu1 %v4203_v54  ;;  %v4204_v13 = vld [vmem:[#allocation2 + $0x330] sm:$0xff] }
 0x4c2   :  { %1973 = vmatpush.bf16.msra.mxu3 %v4198_v32 }
 0x4c8   :  { %3664 = vmatmul.msk.bf16.vlgmr.msra.gmra.mxu2 %vm1432_vm13, %v1685_v45 }
 0x4c9   :  { %2117 = vmatpush.bf16.msra.mxu2 %v4205_v26 }
 0x4cd   :  { %3647 = vmatmul.msk.bf16.gmra.mxu3 %vm1432_vm13, %v1560_v39  ;;  %2118 = vmatpush.bf16.msra.mxu2 %v4204_v13  ;;  %v4210_v13 = vld [vmem:[#allocation2 + $0x360] sm:$0xff] }
 0x4d8   :  { %3665 = vmatmul.msk.bf16.gmra.mxu2 %vm1432_vm13, %v1684_v34 }
 0x4dd   :  { %3670 = vmatmul.msk.bf16.vlgmr.msrb.gmra.mxu3 %vm1432_vm13, %v1732_v46 }
 0x4de   :  { %2172 = vmatpush.bf16.msrb.mxu3 %v4207_v52 }
 0x4ed   :  { %3671 = vmatmul.msk.bf16.gmra.mxu3 %vm1432_vm13, %v1737_v59 }
 0x50b   :  { %v1448_v60 = vpop.f32.mrf.mxu2 }
 0x50c   :  { %v1459_v19 = vadd.f32 %v4305_v18, %v1448_v60 }
 0x513   :  { %v1450_v62 = vpop.f32.mrf.mxu2 }
 0x514   :  { %v1460_v50 = vadd.f32 %v4305_v18, %v1450_v62 }
 0x518   :  { %v1623_v25 = vpop.f32.mrf.mxu0 }
 0x51b   :  { %v1453_v63 = vpop.f32.mrf.mxu2 }
 0x51c   :  { %v1461_v36 = vadd.f32 %v4305_v18, %v1453_v63 }
 0x51d   :  { %v1667_v27 = vpop.f32.mrf.mxu1 }
 0x520   :  { %v1499_v61 = vpop.f32.mrf.mxu3  ;;  %v1625_v34 = vpop.f32.mrf.mxu0 }
 0x521   :  { %v1509_v21 = vadd.f32 %v1499_v61, %v1459_v19  ;;  %v4202_v19 = vld [vmem:[#allocation2 + $0x320] sm:$0xff] }
 0x522   :  { %2069 = vmatpush.bf16.msra.mxu1 %v4202_v19 }
 0x523   :  { %v4646_v1 = vpop.f32.mrf.mxu2 }
 0x525   :  { %v1669_v16 = vpop.f32.mrf.mxu1 }
 0x528   :  { %v1501_v2 = vpop.f32.mrf.mxu3  ;;  %v1628_v44 = vpop.f32.mrf.mxu0 }
 0x529   :  { %v1510_v0 = vadd.f32 %v1501_v2, %v1460_v50 }
 0x52b   :  { %v1539_v3 = vpop.f32.mrf.mxu2 }
 0x52c   :  { %v1549_v24 = vadd.f32 %v1539_v3, %v1509_v21  ;;  %v1462_v3 = vadd.f32 %v4305_v18, %v4646_v1 }
 0x52d   :  { %v1672_v59 = vpop.f32.mrf.mxu1 }
 0x530   :  { %v1504_v6 = vpop.f32.mrf.mxu3  ;;  %v1630_v56 = vpop.f32.mrf.mxu0 }
 0x531   :  { %v1511_v38 = vadd.f32 %v1504_v6, %v1461_v36 }
 0x533   :  { %v1541_v49 = vpop.f32.mrf.mxu2 }
 0x534   :  { %v1550_v29 = vadd.f32 %v1541_v49, %v1510_v0  ;;  %v4200_v49 = vld [vmem:[#allocation2 + $0x310] sm:$0xff] }
 0x535   :  { %2019 = vmatpush.bf16.msra.mxu0 %v4200_v49 }
 0x538   :  { %v4648_v7 = vpop.f32.mrf.mxu3 }
 0x539   :  { %v1512_v10 = vadd.f32 %v4648_v7, %v1462_v3 }
 0x53b   :  { %v1544_v8 = vpop.f32.mrf.mxu2 }
 0x53c   :  { %v1551_v22 = vadd.f32 %v1544_v8, %v1511_v38 }
 0x540   :  { %v1583_v53 = vpop.f32.mrf.mxu3 }
 0x541   :  { %v1593_v14 = vadd.f32 %v1583_v53, %v1549_v24 }
 0x543   :  { %v4650_v5 = vpop.f32.mrf.mxu2  ;;  %v1633_v30 = vadd.f32 %v1623_v25, %v1593_v14 }
 0x545   :  { %v1677_v12 = vadd.f32 %v1667_v27, %v1633_v30 }
 0x548   :  { %v1585_v15 = vpop.f32.mrf.mxu3 }
 0x549   :  { %v1594_v33 = vadd.f32 %v1585_v15, %v1550_v29  ;;  %v4206_v15 = vld [vmem:[#allocation2 + $0x340] sm:$0xff]  ;;  %v1674_v29 = vpop.f32.mrf.mxu1 }
 0x54a   :  { %2173 = vmatpush.bf16.msrb.mxu3 %v4206_v15  ;;  %v4215_v15 = vld [vmem:[#allocation2 + $0x388] sm:$0xff] }
 0x54b   :  { %v1707_v4 = vpop.f32.mrf.mxu2  ;;  %v1634_v40 = vadd.f32 %v1625_v34, %v1594_v33 }
 0x54c   :  { %v1717_v41 = vadd.f32 %v1707_v4, %v1677_v12 }
 0x54d   :  { %v1678_v48 = vadd.f32 %v1669_v16, %v1634_v40 }
 0x550   :  { %v1588_v17 = vpop.f32.mrf.mxu3 }
 0x551   :  { %v1595_v45 = vadd.f32 %v1588_v17, %v1551_v22  ;;  %v1552_v17 = vadd.f32 %v4650_v5, %v1512_v10  ;;  %v4211_v10 = vld [vmem:[#allocation2 + $0x368] sm:$0xff] }
 0x553   :  { %v1709_v43 = vpop.f32.mrf.mxu2  ;;  %v1635_v55 = vadd.f32 %v1628_v44, %v1595_v45 }
 0x554   :  { %v1718_v39 = vadd.f32 %v1709_v43, %v1678_v48 }
 0x555   :  { %v1679_v60 = vadd.f32 %v1672_v59, %v1635_v55 }
 0x558   :  { %v4652_v28 = vpop.f32.mrf.mxu3 }
 0x559   :  { %v1596_v20 = vadd.f32 %v4652_v28, %v1552_v17 }
 0x55b   :  { %v1712_v23 = vpop.f32.mrf.mxu2  ;;  %v1636_v50 = vadd.f32 %v1630_v56, %v1596_v20  ;;  %v4214_v20 = vld [vmem:[#allocation2 + $0x380] sm:$0xff] }
 0x55c   :  { %v1719_v63 = vadd.f32 %v1712_v23, %v1679_v60 }
 0x55d   :  { %v1680_v35 = vadd.f32 %v1674_v29, %v1636_v50  ;;  %v4226_v50 = vld [vmem:[#allocation2 + $0x3e0] sm:$0xff] }
 0x560   :  { %v1759_v37 = vpop.f32.mrf.mxu3 }
 0x561   :  { %v1769_v9 = vadd.f32 %v1759_v37, %v1717_v41 }
 0x563   :  { %v1773_v42 = vmax.f32 %v1769_v9, 0.0  ;;  %v1714_v30 = vpop.f32.mrf.mxu2 }
 0x564   :  { %v1720_v38 = vadd.f32 %v1714_v30, %v1680_v35  ;;  %v4219_v30 = vld [vmem:[#allocation2 + $0x3a8] sm:$0xff] }
 0x565   :  { %v1777_v46 = vpack.c.bf16 %v1773_v42, %v1773_v42 }
 0x567   :  { %v1789_v61 = vunpack.c.l.b16 %v1777_v46 }
 0x568   :  { %v1761_v47 = vpop.f32.mrf.mxu3 }
 0x569   :  { %v1770_v57 = vadd.f32 %v1761_v47, %v1718_v39 }
 0x56b   :  { %v1774_v58 = vmax.f32 %v1770_v57, 0.0 }
 0x56d   :  { %v1778_v62 = vpack.c.bf16 %v1774_v58, %v1774_v58 }
 0x56f   :  { %v1790_v2 = vunpack.c.l.b16 %v1778_v62 }
 0x570   :  { %v1764_v6 = vpop.f32.mrf.mxu3 }
 0x571   :  { %v4655_v53 = vpack.c.b16 %v1790_v2, %v1789_v61  ;;  %v1771_v8 = vadd.f32 %v1764_v6, %v1719_v63 }
 0x573   :  { %v1775_v11 = vmax.f32 %v1771_v8, 0.0  ;;  %3680 = vmatmul.msk.bf16.vlgmr.msrb.gmra.mxu0 %vm1806_vm14, %v4655_v53  ;;  %v4662_v1 = vshll.u32 %v4655_v53, 16  ;;  %v1839_v21 = vshrl.u32 %v4655_v53, 16  ;;  %v1895_v14 = vrot.slane %v4655_v53, 1 }
 0x574   :  { %v1991_v42 = vrot.slane %v4655_v53, 2  ;;  %v2090_v23 = vrot.slane %v4655_v53, 3  ;;  %2234 = vmatpush.bf16.msrb.mxu0 %v4211_v10 }
 0x575   :  { %v1779_v18 = vpack.c.bf16 %v1775_v11, %v1775_v11  ;;  %v1843_v24 = vrot.slane %v4662_v1, 1  ;;  %v1941_v0 = vrot.slane %v1839_v21, 1  ;;  %v1942_v28 = vrot.slane %v4662_v1, 2 }
 0x576   :  { %v2037_v57 = vrot.slane %v1839_v21, 2  ;;  %v2038_v46 = vrot.slane %v4662_v1, 3  ;;  %v2136_v62 = vrot.slane %v1839_v21, 3  ;;  %v2137_v63 = vrot.slane %v4662_v1, 4 }
 0x577   :  { %v1791_v7 = vunpack.c.l.b16 %v1779_v18  ;;  %v1844_v32 = vor.u32 %v1843_v24, %v1839_v21  ;;  %v1943_v40 = vor.u32 %v1942_v28, %v1941_v0  ;;  %v4209_v18 = vld [vmem:[#allocation2 + $0x358] sm:$0xff] }
 0x578   :  { %v1766_v12 = vpop.f32.mrf.mxu3  ;;  %v2039_v2 = vor.u32 %v2038_v46, %v2037_v57  ;;  %v2138_v49 = vor.u32 %v2137_v63, %v2136_v62  ;;  %2235 = vmatpush.bf16.msrb.mxu0 %v4210_v13  ;;  %v4225_v0 = vld [vmem:[#allocation2 + $0x3d8] sm:$0xff] }
 0x579   :  { %v4666_v25 = vpack.c.b16 %v1791_v7, %v1791_v7  ;;  %v1772_v16 = vadd.f32 %v1766_v12, %v1720_v38  ;;  %v4228_v12 = vld [vmem:[#allocation2 + $0x3f0] sm:$0xff]  ;;  %v4243_v38 = vld [vmem:[#allocation2 + $0x468] sm:$0xff]  ;;  %v4245_v46 = vld [vmem:[#allocation2 + $0x478] sm:$0xff] }
 0x57b   :  { %v1845_v5 = vshll.u32 %v4666_v25, 16  ;;  %v1849_v27 = vshrl.u32 %v4666_v25, 16  ;;  %v1896_v4 = vrot.slane %v4666_v25, 1  ;;  %v1776_v22 = vmax.f32 %v1772_v16, 0.0 }
 0x57c   :  { %v1992_v39 = vrot.slane %v4666_v25, 2  ;;  %2236 = vmatpush.bf16.msrb.mxu0 %v4209_v18 }
 0x57d   :  { %v1897_v31 = vsel %vm795_vm3, %v1895_v14, %v1896_v4  ;;  %v1847_v33 = vrot.slane %v1845_v5, 1  ;;  %v1944_v34 = vrot.slane %v1849_v27, 1  ;;  %v1945_v36 = vrot.slane %v1845_v5, 2  ;;  %v4230_v14 = vld [vmem:[#allocation2 + $0x400] sm:$0xff] }
 0x57e   :  { %3700 = vmatmul.msk.bf16.vlgmr.msrb.gmra.mxu2 %vm1806_vm14, %v1897_v31  ;;  %v1780_v9 = vpack.c.bf16 %v1776_v22, %v1776_v22  ;;  %v1993_v51 = vsel %vm1003_vm9, %v1991_v42, %v1992_v39  ;;  %v2040_v47 = vrot.slane %v1849_v27, 2  ;;  %v2041_v54 = vrot.slane %v1845_v5, 3  ;;  %v4229_v31 = vld [vmem:[#allocation2 + $0x3f8] sm:$0xff]  ;;  %v4247_v22 = vld [vmem:[#allocation2 + $0x488] sm:$0xff] }
 0x57f   :  { %v1848_v37 = vsel %vm677_vm4, %v1844_v32, %v1847_v33  ;;  %v1946_v41 = vor.u32 %v1945_v36, %v1944_v34  ;;  %v1851_v48 = vor.u32 %v1849_v27, %v1847_v33  ;;  %v4208_v27 = vld [vmem:[#allocation2 + $0x350] sm:$0xff]  ;;  %v4218_v36 = vld [vmem:[#allocation2 + $0x3a0] sm:$0xff] }
 0x580   :  { %3690 = vmatmul.msk.bf16.vlgmr.msrb.gmra.mxu1 %vm1806_vm14, %v1848_v37  ;;  %v2088_v45 = vunpack.c.l.b16 %v1780_v9  ;;  %v2042_v60 = vor.u32 %v2041_v54, %v2040_v47  ;;  %2237 = vmatpush.bf16.msrb.mxu0 %v4208_v27  ;;  %v4212_v33 = vld [vmem:[#allocation2 + $0x370] sm:$0xff]  ;;  %v4223_v37 = vld [vmem:[#allocation2 + $0x3c8] sm:$0xff]  ;;  %v4241_v47 = vld [vmem:[#allocation2 + $0x458] sm:$0xff] }
 0x581   :  { %v1947_v43 = vsel %vm896_vm8, %v1943_v40, %v1946_v41  ;;  %2289 = vmatpush.bf16.msrb.mxu1 %v4215_v15  ;;  %v4224_v34 = vld [vmem:[#allocation2 + $0x3d0] sm:$0xff]  ;;  %v4720_v40 = vld [vmem:[#allocation5 + $0x6] ss:$0 sm:$0xff] }
 0x582   :  { %3710 = vmatmul.msk.bf16.vlgmr.msra.gmra.mxu3 %vm1806_vm14, %v1947_v43  ;;  %v2089_v26 = vpack.c.b16 %v2088_v45, %v1791_v7  ;;  %v2043_v6 = vsel %vm1104_vm11, %v2039_v2, %v2042_v60  ;;  %v4227_v7 = vld [vmem:[#allocation2 + $0x3e8] sm:$0xff]  ;;  %v4217_v43 = vld [vmem:[#allocation2 + $0x398] sm:$0xff]  ;;  %v4222_v45 = vld [vmem:[#allocation2 + $0x3c0] sm:$0xff] }
 0x583   :  { %3681 = vmatmul.msk.bf16.gmra.mxu0 %vm1806_vm14, %v4666_v25  ;;  %2439 = vmatpush.bf16.msrb.mxu2 %v4227_v7  ;;  %v4231_v25 = vld [vmem:[#allocation2 + $0x408] sm:$0xff]  ;;  %v4244_v2 = vld [vmem:[#allocation2 + $0x470] sm:$0xff] }
 0x584   :  { %v2140_v52 = vshrl.u32 %v2089_v26, 16  ;;  %v2143_v44 = vshll.u32 %v2089_v26, 16  ;;  %v2091_v55 = vrot.slane %v2089_v26, 3  ;;  %2489 = vmatpush.bf16.msra.mxu3 %v4231_v25  ;;  %v4216_v26 = vld [vmem:[#allocation2 + $0x390] sm:$0xff] }
 0x585   :  { %2290 = vmatpush.bf16.msrb.mxu1 %v4214_v20  ;;  %v4235_v20 = vld [vmem:[#allocation2 + $0x428] sm:$0xff] }
 0x586   :  { %v2142_v58 = vrot.slane %v2140_v52, 3  ;;  %v2145_v59 = vrot.slane %v2143_v44, 4  ;;  %v2092_v61 = vsel %vm1211_vm10, %v2090_v23, %v2091_v55  ;;  %v4221_v44 = vld [vmem:[#allocation2 + $0x3b8] sm:$0xff]  ;;  %v4220_v23 = vld [vmem:[#allocation2 + $0x3b0] sm:$0xff] }
 0x587   :  { %2440 = vmatpush.bf16.msrb.mxu2 %v4226_v50 }
 0x588   :  { %v2146_v3 = vor.u32 %v2145_v59, %v2142_v58  ;;  %2490 = vmatpush.bf16.msra.mxu3 %v4230_v14 }
 0x58a   :  { %v2147_v8 = vsel %vm1312_vm12, %v2138_v49, %v2146_v3 }
 0x58b   :  { %2441 = vmatpush.bf16.msrb.mxu2 %v4225_v0  ;;  %v4259_v0 = vld [vmem:[#allocation2 + $0x4e8] sm:$0xff] }
 0x58c   :  { %2491 = vmatpush.bf16.msra.mxu3 %v4229_v31 }
 0x58e   :  { %3701 = vmatmul.msk.bf16.gmra.mxu2 %vm1806_vm14, %v1896_v4  ;;  %v4213_v4 = vld [vmem:[#allocation2 + $0x378] sm:$0xff] }
 0x58f   :  { %2291 = vmatpush.bf16.msrb.mxu1 %v4213_v4  ;;  %2442 = vmatpush.bf16.msrb.mxu2 %v4224_v34  ;;  %v4239_v4 = vld [vmem:[#allocation2 + $0x448] sm:$0xff] }
 0x590   :  { %3691 = vmatmul.msk.bf16.gmra.mxu1 %vm1806_vm14, %v1851_v48  ;;  %2492 = vmatpush.bf16.msra.mxu3 %v4228_v12  ;;  %v4242_v48 = vld [vmem:[#allocation2 + $0x460] sm:$0xff] }
 0x591   :  { %v4238_v12 = vld [vmem:[#allocation2 + $0x440] sm:$0xff] }
 0x592   :  { %3711 = vmatmul.msk.bf16.gmra.mxu3 %vm1806_vm14, %v1946_v41 }
 0x593   :  { %3720 = vmatmul.msk.bf16.vlgmr.msra.gmra.mxu0 %vm1806_vm14, %v1993_v51  ;;  %2292 = vmatpush.bf16.msrb.mxu1 %v4212_v33  ;;  %v4246_v51 = vld [vmem:[#allocation2 + $0x480] sm:$0xff]  ;;  %v4263_v33 = vld [vmem:[#allocation2 + $0x508] sm:$0xff] }
 0x594   :  { %2339 = vmatpush.bf16.msra.mxu0 %v4219_v30 }
 0x598   :  { %2340 = vmatpush.bf16.msra.mxu0 %v4218_v36 }
 0x59c   :  { %2341 = vmatpush.bf16.msra.mxu0 %v4217_v43  ;;  %v4232_v43 = vld [vmem:[#allocation2 + $0x410] sm:$0xff] }
 0x59e   :  { %3740 = vmatmul.msk.bf16.vlgmr.msra.gmra.mxu2 %vm1806_vm14, %v2092_v61 }
 0x59f   :  { %2638 = vmatpush.bf16.msra.mxu2 %v4243_v38 }
 0x5a0   :  { %3730 = vmatmul.msk.bf16.vlgmr.msra.gmra.mxu1 %vm1806_vm14, %v2043_v6  ;;  %2342 = vmatpush.bf16.msra.mxu0 %v4216_v26  ;;  %v4261_v26 = vld [vmem:[#allocation2 + $0x4f8] sm:$0xff] }
 0x5a1   :  { %2389 = vmatpush.bf16.msra.mxu1 %v4223_v37  ;;  %v4258_v37 = vld [vmem:[#allocation2 + $0x4e0] sm:$0xff] }
 0x5a2   :  { %3750 = vmatmul.msk.bf16.vlgmr.msrb.gmra.mxu3 %vm1806_vm14, %v2147_v8 }
 0x5a3   :  { %3721 = vmatmul.msk.bf16.gmra.mxu0 %vm1806_vm14, %v1992_v39  ;;  %2693 = vmatpush.bf16.msrb.mxu3 %v4247_v22  ;;  %v4262_v22 = vld [vmem:[#allocation2 + $0x500] sm:$0xff] }
 0x5a4   :  { %2639 = vmatpush.bf16.msra.mxu2 %v4242_v48  ;;  %v4257_v48 = vld [vmem:[#allocation2 + $0x4d8] sm:$0xff] }
 0x5a5   :  { %2390 = vmatpush.bf16.msra.mxu1 %v4222_v45  ;;  %v4237_v45 = vld [vmem:[#allocation2 + $0x438] sm:$0xff] }
 0x5a7   :  { %2694 = vmatpush.bf16.msrb.mxu3 %v4246_v51 }
 0x5a8   :  { %2640 = vmatpush.bf16.msra.mxu2 %v4241_v47  ;;  %v4256_v47 = vld [vmem:[#allocation2 + $0x4d0] sm:$0xff] }
 0x5a9   :  { %2391 = vmatpush.bf16.msra.mxu1 %v4221_v44  ;;  %v4236_v44 = vld [vmem:[#allocation2 + $0x430] sm:$0xff] }
 0x5ab   :  { %2695 = vmatpush.bf16.msrb.mxu3 %v4245_v46 }
 0x5ad   :  { %2392 = vmatpush.bf16.msra.mxu1 %v4220_v23  ;;  %v4275_v23 = vld [vmem:[#allocation2 + $0x568] sm:$0xff] }
 0x5ae   :  { %3741 = vmatmul.msk.bf16.gmra.mxu2 %vm1806_vm14, %v2091_v55 }
 0x5af   :  { %2696 = vmatpush.bf16.msrb.mxu3 %v4244_v2 }
 0x5b0   :  { %3731 = vmatmul.msk.bf16.gmra.mxu1 %vm1806_vm14, %v2042_v60  ;;  %v4240_v60 = vld [vmem:[#allocation2 + $0x450] sm:$0xff] }
 0x5b1   :  { %2641 = vmatpush.bf16.msra.mxu2 %v4240_v60 }
 0x5b2   :  { %3751 = vmatmul.msk.bf16.gmra.mxu3 %vm1806_vm14, %v2146_v3 }
 0x5f0   :  { %v4702_v53 = vpop.f32.mrf.mxu0 }
 0x5f1   :  { %v1832_v39 = vadd.f32 %v4720_v40, %v4702_v53 }
 0x5f8   :  { %v4704_v11 = vpop.f32.mrf.mxu0 }
 0x5f9   :  { %v1833_v62 = vadd.f32 %v4720_v40, %v4704_v11 }
 0x5fd   :  { %v1879_v17 = vpop.f32.mrf.mxu1 }
 0x5fe   :  { %v1888_v52 = vadd.f32 %v1879_v17, %v1832_v39 }
 0x600   :  { %v4706_v19 = vpop.f32.mrf.mxu0 }
 0x601   :  { %v4708_v1 = vpop.f32.mrf.mxu2  ;;  %v1834_v60 = vadd.f32 %v4720_v40, %v4706_v19  ;;  %v4248_v40 = vld [vmem:[#allocation2 + $0x490] sm:$0xff] }
 0x602   :  { %v1934_v54 = vadd.f32 %v4708_v1, %v1888_v52 }
 0x605   :  { %v4710_v21 = vpop.f32.mrf.mxu1  ;;  %v1975_v56 = vpop.f32.mrf.mxu3 }
 0x606   :  { %v1984_v58 = vadd.f32 %v1975_v56, %v1934_v54  ;;  %v1889_v3 = vadd.f32 %v4710_v21, %v1833_v62 }
 0x608   :  { %v1829_v24 = vpop.f32.mrf.mxu0 }
 0x609   :  { %v4712_v5 = vpop.f32.mrf.mxu2 }
 0x60a   :  { %v1935_v49 = vadd.f32 %v4712_v5, %v1889_v3  ;;  %v4234_v5 = vld [vmem:[#allocation2 + $0x420] sm:$0xff] }
 0x60d   :  { %v4714_v28 = vpop.f32.mrf.mxu1  ;;  %v4716_v29 = vpop.f32.mrf.mxu3 }
 0x60e   :  { %v1985_v13 = vadd.f32 %v4716_v29, %v1935_v49  ;;  %v1890_v2 = vadd.f32 %v4714_v28, %v1834_v60  ;;  %v4274_v49 = vld [vmem:[#allocation2 + $0x560] sm:$0xff] }
 0x60f   :  { %v4278_v28 = vld [vmem:[#allocation2 + $0x580] sm:$0xff] }
 0x610   :  { %v2021_v32 = vpop.f32.mrf.mxu0 }
 0x611   :  { %v4718_v35 = vpop.f32.mrf.mxu2  ;;  %v2030_v63 = vadd.f32 %v2021_v32, %v1984_v58  ;;  %v4233_v32 = vld [vmem:[#allocation2 + $0x418] sm:$0xff]  ;;  %v4255_v58 = vld [vmem:[#allocation2 + $0x4c8] sm:$0xff] }
 0x612   :  { %v1936_v19 = vadd.f32 %v4718_v35, %v1890_v2 }
 0x615   :  { %v1886_v41 = vpop.f32.mrf.mxu1  ;;  %v4722_v16 = vpop.f32.mrf.mxu3 }
 0x618   :  { %v2023_v9 = vpop.f32.mrf.mxu0 }
 0x619   :  { %v1932_v42 = vpop.f32.mrf.mxu2  ;;  %v2031_v1 = vadd.f32 %v2023_v9, %v1985_v13 }
 0x61a   :  { %v4251_v42 = vld [vmem:[#allocation2 + $0x4a8] sm:$0xff] }
 0x61d   :  { %v2071_v55 = vpop.f32.mrf.mxu1  ;;  %v1982_v57 = vpop.f32.mrf.mxu3 }
 0x61e   :  { %v2080_v6 = vadd.f32 %v2071_v55, %v2030_v63  ;;  %v4250_v55 = vld [vmem:[#allocation2 + $0x4a0] sm:$0xff]  ;;  %v4260_v57 = vld [vmem:[#allocation2 + $0x4f0] sm:$0xff]  ;;  %v4249_v63 = vld [vmem:[#allocation2 + $0x498] sm:$0xff] }
 0x620   :  { %v4727_v59 = vpop.f32.mrf.mxu0 }
 0x621   :  { %v2120_v61 = vpop.f32.mrf.mxu2 }
 0x622   :  { %v2129_v8 = vadd.f32 %v2120_v61, %v2080_v6  ;;  %v4279_v61 = vld [vmem:[#allocation2 + $0x588] sm:$0xff]  ;;  %v4254_v6 = vld [vmem:[#allocation2 + $0x4c0] sm:$0xff] }
 0x625   :  { %v2073_v53 = vpop.f32.mrf.mxu1  ;;  %v2175_v10 = vpop.f32.mrf.mxu3 }
 0x626   :  { %v2184_v15 = vadd.f32 %v2175_v10, %v2129_v8  ;;  %v2081_v7 = vadd.f32 %v2073_v53, %v2031_v1  ;;  %v1986_v8 = vadd.f32 %v4722_v16, %v1936_v19  ;;  %v4253_v53 = vld [vmem:[#allocation2 + $0x4b8] sm:$0xff] }
 0x627   :  { %v4273_v10 = vld [vmem:[#allocation2 + $0x558] sm:$0xff] }
 0x628   :  { %v2028_v17 = vpop.f32.mrf.mxu0  ;;  %v2187_v11 = vmax.f32 %v2184_v15, 0.0  ;;  %v2032_v13 = vadd.f32 %v4727_v59, %v1986_v8  ;;  %v4267_v15 = vld [vmem:[#allocation2 + $0x528] sm:$0xff]  ;;  %v4276_v59 = vld [vmem:[#allocation2 + $0x570] sm:$0xff] }
 0x629   :  { %v2122_v18 = vpop.f32.mrf.mxu2  ;;  %v4277_v17 = vld [vmem:[#allocation2 + $0x578] sm:$0xff] }
 0x62a   :  { %v2190_v56 = vpack.c.bf16 %v2187_v11, %v2187_v11  ;;  %v2130_v21 = vadd.f32 %v2122_v18, %v2081_v7  ;;  %v4252_v11 = vld [vmem:[#allocation2 + $0x4b0] sm:$0xff] }
 0x62b   :  { %v4272_v18 = vld [vmem:[#allocation2 + $0x550] sm:$0xff] }
 0x62c   :  { %v2253_v25 = vunpack.c.l.b16 %v2190_v56  ;;  %3768 = vmatmul.msk.bf16.vlgmr.msrb.gmra.mxu0 %vm2226_vm15, %v2190_v56  ;;  %v4271_v56 = vld [vmem:[#allocation2 + $0x548] sm:$0xff] }
 0x62d   :  { %v4735_v24 = vpop.f32.mrf.mxu1  ;;  %v2177_v50 = vpop.f32.mrf.mxu3  ;;  %2539 = vmatpush.bf16.msrb.mxu0 %v4235_v20  ;;  %v4266_v20 = vld [vmem:[#allocation2 + $0x520] sm:$0xff] }
 0x62e   :  { %v4737_v27 = vpack.c.b16 %v2253_v25, %v2253_v25  ;;  %v2185_v14 = vadd.f32 %v2177_v50, %v2130_v21  ;;  %v2082_v1 = vadd.f32 %v4735_v24, %v2032_v13  ;;  %v4265_v24 = vld [vmem:[#allocation2 + $0x518] sm:$0xff] }
 0x630   :  { %v4740_v29 = vshrl.u32 %v4737_v27, 16  ;;  %v2407_v30 = vrot.slane %v4737_v27, 2  ;;  %v2188_v34 = vmax.f32 %v2185_v14, 0.0  ;;  %v2307_v51 = vrot.slane %v4737_v27, 1  ;;  %v3171_v14 = vld [vmem:[#allocation2 + $0x5e0] sm:$0x3] }
 0x631   :  { %v4743_v31 = vpop.f32.mrf.mxu2  ;;  %2540 = vmatpush.bf16.msrb.mxu0 %v4234_v5  ;;  %v2507_v35 = vrot.slane %v4737_v27, 3  ;;  %v4270_v27 = vld [vmem:[#allocation2 + $0x540] sm:$0xff] }
 0x632   :  { %3785 = vmatmul.msk.bf16.vlgmr.msrb.gmra.mxu1 %vm2226_vm15, %v4740_v29  ;;  %3836 = vmatmul.msk.bf16.vlgmr.msrb.gmra.mxu2 %vm2226_vm15, %v2407_v30  ;;  %v2457_v36 = vrot.slane %v4740_v29, 2  ;;  %v2191_v9 = vpack.c.bf16 %v2188_v34, %v2188_v34  ;;  %v2357_v62 = vrot.slane %v4740_v29, 1  ;;  %v2131_v16 = vadd.f32 %v4743_v31, %v2082_v1  ;;  %v4283_v31 = vld [vmem:[#allocation2 + $0x5a8] sm:$0xff]  ;;  %v4268_v34 = vld [vmem:[#allocation2 + $0x530] sm:$0xff] }
 0x633   :  { %2589 = vmatpush.bf16.msrb.mxu1 %v4239_v4  ;;  %2843 = vmatpush.bf16.msrb.mxu2 %v4259_v0  ;;  %v2557_v21 = vrot.slane %v4740_v29, 3  ;;  %v4264_v4 = vld [vmem:[#allocation2 + $0x510] sm:$0xff]  ;;  %v4269_v29 = vld [vmem:[#allocation2 + $0x538] sm:$0xff]  ;;  %v3198_v30 = vunpack.c.l.b16 %v3171_v14 }
 0x634   :  { %3853 = vmatmul.msk.bf16.vlgmr.msra.gmra.mxu3 %vm2226_vm15, %v2457_v36  ;;  %v2657_v52 = vunpack.c.l.b16 %v2191_v9 }
 0x635   :  { %v2078_v38 = vpop.f32.mrf.mxu1  ;;  %v4750_v41 = vpop.f32.mrf.mxu3  ;;  %2541 = vmatpush.bf16.msrb.mxu0 %v4233_v32  ;;  %2893 = vmatpush.bf16.msra.mxu3 %v4263_v33  ;;  %v3205_v36 = vpack.c.b16 %v3198_v30, %v3198_v30 }
 0x636   :  { %v4754_v46 = vpack.c.b16 %v2657_v52, %v2657_v52  ;;  %v2186_v7 = vadd.f32 %v4750_v41, %v2131_v16 }
 0x637   :  { %2590 = vmatpush.bf16.msrb.mxu1 %v4238_v12  ;;  %2844 = vmatpush.bf16.msrb.mxu2 %v4258_v37  ;;  %v4282_v12 = vld [vmem:[#allocation2 + $0x5a0] sm:$0xff]  ;;  %v3217_v38 = vsel %vm87_vm1, %v3205_v36, 0  ;;  %vm3212_vm1 = vcmask 818176  }
 0x638   :  { %v4761_v3 = vshrl.u32 %v4754_v46, 16  ;;  %v2811_v25 = vrot.slane %v4754_v46, 2  ;;  %v2189_v50 = vmax.f32 %v2186_v7, 0.0  ;;  %v2711_v32 = vrot.slane %v4754_v46, 1  ;;  %v4285_v7 = vld [vmem:[#allocation2 + $0x5b8] sm:$0xff] }
 0x639   :  { %v2127_v39 = vpop.f32.mrf.mxu2  ;;  %2542 = vmatpush.bf16.msrb.mxu0 %v4232_v43  ;;  %2894 = vmatpush.bf16.msra.mxu3 %v4262_v22  ;;  %v4281_v43 = vld [vmem:[#allocation2 + $0x598] sm:$0xff] }
 0x63a   :  { %v2861_v5 = vrot.slane %v4761_v3, 2  ;;  %v2192_v0 = vpack.c.bf16 %v2189_v50, %v2189_v50  ;;  %v2761_v41 = vrot.slane %v4761_v3, 1 }
 0x63b   :  { %2591 = vmatpush.bf16.msrb.mxu1 %v4237_v45  ;;  %2845 = vmatpush.bf16.msrb.mxu2 %v4257_v48  ;;  %v2911_v45 = vrot.slane %v4754_v46, 3  ;;  %v2961_v48 = vrot.slane %v4761_v3, 3 }
 0x63c   :  { %3802 = vmatmul.msk.bf16.vlgmr.msra.gmra.mxu0 %vm2226_vm15, %v2307_v51  ;;  %v3061_v33 = vunpack.c.l.b16 %v2192_v0 }
 0x63d   :  { %v2182_v54 = vpop.f32.mrf.mxu3  ;;  %2743 = vmatpush.bf16.msra.mxu0 %v4251_v42  ;;  %2895 = vmatpush.bf16.msra.mxu3 %v4261_v26 }
 0x63e   :  { %v3062_v37 = vpack.c.b16 %v3061_v33, %v3061_v33 }
 0x63f   :  { %2592 = vmatpush.bf16.msrb.mxu1 %v4236_v44  ;;  %2846 = vmatpush.bf16.msrb.mxu2 %v4256_v47 }
 0x640   :  { %v3064_v22 = vshrl.u32 %v3062_v37, 16  ;;  %v3115_v39 = vrot.slane %v3062_v37, 1 }
 0x641   :  { %2744 = vmatpush.bf16.msra.mxu0 %v4250_v55  ;;  %2896 = vmatpush.bf16.msra.mxu3 %v4260_v57 }
 0x642   :  { %3819 = vmatmul.msk.bf16.vlgmr.msra.gmra.mxu1 %vm2226_vm15, %v2357_v62  ;;  %3904 = vmatmul.msk.bf16.vlgmr.msra.gmra.mxu2 %vm2226_vm15, %v2191_v9  ;;  %v4280_v9 = vld [vmem:[#allocation2 + $0x590] sm:$0xff] }
 0x643   :  { %2793 = vmatpush.bf16.msra.mxu1 %v4255_v58  ;;  %3042 = vmatpush.bf16.msra.mxu2 %v4275_v23  ;;  %v2193_v23 = vld [vmem:[#allocation5 + $0x7] sm:$0x1] }
 0x644   :  { %3921 = vmatmul.msk.bf16.vlgmr.msrb.gmra.mxu3 %vm2226_vm15, %v4761_v3 }
 0x645   :  { %2745 = vmatpush.bf16.msra.mxu0 %v4249_v63  ;;  %3097 = vmatpush.bf16.msrb.mxu3 %v4279_v61 }
 0x647   :  { %2794 = vmatpush.bf16.msra.mxu1 %v4254_v6  ;;  %3043 = vmatpush.bf16.msra.mxu2 %v4274_v49  ;;  %v4289_v6 = vld [vmem:[#allocation2 + $0x5d8] sm:$0xff] }
 0x649   :  { %2746 = vmatpush.bf16.msra.mxu0 %v4248_v40  ;;  %3098 = vmatpush.bf16.msrb.mxu3 %v4278_v28  ;;  %v4288_v28 = vld [vmem:[#allocation2 + $0x5d0] sm:$0xff] }
 0x64b   :  { %2795 = vmatpush.bf16.msra.mxu1 %v4253_v53  ;;  %3044 = vmatpush.bf16.msra.mxu2 %v4273_v10 }
 0x64c   :  { %3870 = vmatmul.msk.bf16.vlgmr.msrb.gmra.mxu0 %vm2226_vm15, %v2507_v35 }
 0x64d   :  { %2943 = vmatpush.bf16.msrb.mxu0 %v4267_v15  ;;  %3099 = vmatpush.bf16.msrb.mxu3 %v4277_v17  ;;  %v4287_v15 = vld [vmem:[#allocation2 + $0x5c8] sm:$0xff]  ;;  %v4286_v17 = vld [vmem:[#allocation2 + $0x5c0] sm:$0xff] }
 0x64f   :  { %2796 = vmatpush.bf16.msra.mxu1 %v4252_v11  ;;  %3045 = vmatpush.bf16.msra.mxu2 %v4272_v18 }
 0x651   :  { %2944 = vmatpush.bf16.msrb.mxu0 %v4266_v20  ;;  %3100 = vmatpush.bf16.msrb.mxu3 %v4276_v59 }
 0x652   :  { %3887 = vmatmul.msk.bf16.vlgmr.msrb.gmra.mxu1 %vm2226_vm15, %v2557_v21  ;;  %3972 = vmatmul.msk.bf16.vlgmr.msrb.gmra.mxu2 %vm2226_vm15, %v2811_v25  ;;  %v4284_v21 = vld [vmem:[#allocation2 + $0x5b0] sm:$0xff] }
 0x653   :  { %2993 = vmatpush.bf16.msrb.mxu1 %v4271_v56 }
 0x654   :  { %3989 = vmatmul.msk.bf16.vlgmr.msra.gmra.mxu3 %vm2226_vm15, %v2861_v5 }
 0x655   :  { %2945 = vmatpush.bf16.msrb.mxu0 %v4265_v24 }
 0x657   :  { %2994 = vmatpush.bf16.msrb.mxu1 %v4270_v27 }
 0x659   :  { %2946 = vmatpush.bf16.msrb.mxu0 %v4264_v4 }
 0x65b   :  { %2995 = vmatpush.bf16.msrb.mxu1 %v4269_v29 }
 0x65c   :  { %3938 = vmatmul.msk.bf16.vlgmr.msra.gmra.mxu0 %vm2226_vm15, %v2711_v32 }
 0x65d   :  { %3147 = vmatpush.bf16.msra.mxu0 %v4283_v31 }
 0x65f   :  { %2996 = vmatpush.bf16.msrb.mxu1 %v4268_v34 }
 0x661   :  { %3148 = vmatpush.bf16.msra.mxu0 %v4282_v12 }
 0x662   :  { %3955 = vmatmul.msk.bf16.vlgmr.msra.gmra.mxu1 %vm2226_vm15, %v2761_v41  ;;  %4040 = vmatmul.msk.bf16.vlgmr.msra.gmra.mxu2 %vm2226_vm15, %v2192_v0 }
 0x663   :  { %3220 = vmatpush.bf16.msra.mxu1 %v3217_v38 }
 0x664   :  { %4057 = vmatmul.msk.bf16.vlgmr.msrb.gmra.mxu3 %vm2226_vm15, %v3064_v22 }
 0x665   :  { %3149 = vmatpush.bf16.msra.mxu0 %v4281_v43 }
 0x667   :  { %3221 = vmatpush.bf16.msra.mxu1 %v4289_v6 }
 0x669   :  { %3150 = vmatpush.bf16.msra.mxu0 %v4280_v9 }
 0x66b   :  { %3222 = vmatpush.bf16.msra.mxu1 %v4288_v28 }
 0x66c   :  { %4006 = vmatmul.msk.bf16.vlgmr.msrb.gmra.mxu0 %vm2226_vm15, %v2911_v45 }
 0x66f   :  { %3223 = vmatpush.bf16.msra.mxu1 %v4287_v15 }
 0x672   :  { %4023 = vmatmul.msk.bf16.vlgmr.msrb.gmra.mxu1 %vm2226_vm15, %v2961_v48 }
 0x673   :  { %3224 = vmatpush.bf16.msra.mxu1 %v4286_v17 }
 0x677   :  { %3225 = vmatpush.bf16.msra.mxu1 %v4285_v7 }
 0x67b   :  { %3226 = vmatpush.bf16.msra.mxu1 %v4284_v21 }
 0x67c   :  { %4074 = vmatmul.msk.bf16.vlgmr.msra.gmra.mxu0 %vm2226_vm15, %v3115_v39 }
 0x6a9   :  { %v2239_v42 = vpop.f32.mrf.mxu0 }
 0x6aa   :  { %v2243_v62 = vadd.f32 %v2239_v42, %v2193_v23 }
 0x6af   :  { %v2294_v26 = vpop.f32.mrf.mxu1 }
 0x6b0   :  { %v2298_v2 = vadd.f32 %v2294_v26, %v2243_v62 }
 0x6b1   :  { %v2241_v51 = vpop.f32.mrf.mxu0 }
 0x6b2   :  { %v3172_v51 = vld [vmem:[#allocation5 + $0x8] sm:$0x1] }
 0x6b5   :  { %v2444_v52 = vpop.f32.mrf.mxu2 }
 0x6b7   :  { %v2296_v44 = vpop.f32.mrf.mxu1  ;;  %v2494_v47 = vpop.f32.mrf.mxu3 }
 0x6b9   :  { %v2344_v54 = vpop.f32.mrf.mxu0 }
 0x6ba   :  { %v2348_v49 = vadd.f32 %v2344_v54, %v2298_v2 }
 0x6bd   :  { %v2446_v55 = vpop.f32.mrf.mxu2 }
 0x6bf   :  { %v2394_v57 = vpop.f32.mrf.mxu1  ;;  %v2496_v58 = vpop.f32.mrf.mxu3 }
 0x6c0   :  { %v2398_v19 = vadd.f32 %v2394_v57, %v2348_v49 }
 0x6c1   :  { %v2346_v46 = vpop.f32.mrf.mxu0 }
 0x6c2   :  { %v2448_v10 = vadd.f32 %v2444_v52, %v2398_v19 }
 0x6c4   :  { %v2498_v35 = vadd.f32 %v2494_v47, %v2448_v10 }
 0x6c5   :  { %v2643_v60 = vpop.f32.mrf.mxu2 }
 0x6c7   :  { %v2396_v63 = vpop.f32.mrf.mxu1  ;;  %v2698_v61 = vpop.f32.mrf.mxu3 }
 0x6c9   :  { %v2544_v3 = vpop.f32.mrf.mxu0 }
 0x6ca   :  { %v2548_v11 = vadd.f32 %v2544_v3, %v2498_v35 }
 0x6cd   :  { %v2645_v40 = vpop.f32.mrf.mxu2 }
 0x6cf   :  { %v2594_v8 = vpop.f32.mrf.mxu1  ;;  %v2700_v53 = vpop.f32.mrf.mxu3 }
 0x6d0   :  { %v2598_v20 = vadd.f32 %v2594_v8, %v2548_v11 }
 0x6d1   :  { %v2546_v13 = vpop.f32.mrf.mxu0 }
 0x6d2   :  { %v2647_v56 = vadd.f32 %v2643_v60, %v2598_v20 }
 0x6d4   :  { %v2702_v5 = vadd.f32 %v2698_v61, %v2647_v56 }
 0x6d5   :  { %v2848_v1 = vpop.f32.mrf.mxu2 }
 0x6d7   :  { %v2596_v18 = vpop.f32.mrf.mxu1  ;;  %v2898_v16 = vpop.f32.mrf.mxu3 }
 0x6d9   :  { %v2748_v59 = vpop.f32.mrf.mxu0 }
 0x6da   :  { %v2752_v14 = vadd.f32 %v2748_v59, %v2702_v5 }
 0x6dd   :  { %v2850_v25 = vpop.f32.mrf.mxu2 }
 0x6df   :  { %v2798_v24 = vpop.f32.mrf.mxu1  ;;  %v2900_v50 = vpop.f32.mrf.mxu3 }
 0x6e0   :  { %v2802_v4 = vadd.f32 %v2798_v24, %v2752_v14 }
 0x6e1   :  { %v2750_v27 = vpop.f32.mrf.mxu0 }
 0x6e2   :  { %v2852_v31 = vadd.f32 %v2848_v1, %v2802_v4 }
 0x6e4   :  { %v2902_v33 = vadd.f32 %v2898_v16, %v2852_v31 }
 0x6e5   :  { %v3047_v0 = vpop.f32.mrf.mxu2 }
 0x6e7   :  { %v2800_v29 = vpop.f32.mrf.mxu1  ;;  %v3102_v30 = vpop.f32.mrf.mxu3 }
 0x6e9   :  { %v2948_v32 = vpop.f32.mrf.mxu0 }
 0x6ea   :  { %v2952_v36 = vadd.f32 %v2948_v32, %v2902_v33 }
 0x6ed   :  { %v3049_v34 = vpop.f32.mrf.mxu2 }
 0x6ef   :  { %v2998_v12 = vpop.f32.mrf.mxu1  ;;  %v3104_v37 = vpop.f32.mrf.mxu3 }
 0x6f0   :  { %v3002_v38 = vadd.f32 %v2998_v12, %v2952_v36 }
 0x6f1   :  { %v2950_v41 = vpop.f32.mrf.mxu0 }
 0x6f2   :  { %v3051_v43 = vadd.f32 %v3047_v0, %v3002_v38 }
 0x6f4   :  { %v3106_v9 = vadd.f32 %v3102_v30, %v3051_v43 }
 0x6f7   :  { %v3000_v22 = vpop.f32.mrf.mxu1 }
 0x6f9   :  { %v3152_v45 = vpop.f32.mrf.mxu0 }
 0x6fa   :  { %v3156_v48 = vadd.f32 %v3152_v45, %v3106_v9 }
 0x6fc   :  { %v3157_v39 = vmax.f32 %v3156_v48, 0.0 }
 0x6fe   :  { %v3158_v42 = vpack.c.bf16 %v3157_v39, %v3157_v39 }
 0x700   :  { %4099 = vmatmul.msk.bf16.vlgmr.msra.gmra.mxu1 %vm3212_vm1, %v3158_v42 }
 0x701   :  { %v3154_v26 = vpop.f32.mrf.mxu0 }
 0x77d   :  { %v3228_v52 = vpop.f32.mrf.mxu1 }
 0x77e   :  { %v3229_v44 = vadd.f32 %v3228_v52, %v3172_v51 }
 0x780   :  { %v3233_v47 = vsel %vm3232_vm0, %v3229_v44, -inf }
 0x781   :  { %3234 = vmax.xlane.f32.xlu1 %v3233_v47 }
 0x785   :  { %v3230_v54 = vpop.f32.mrf.mxu1 }
 0x7f4   :  { %v3235_v55 = vpop.xlane.xlu1 %3234 }
 0x7f5   :  { %v3236_v57 = vsub.f32 %v3229_v44, %v3235_v55 }
 0x7f7   :  { %v3237_v58 = vmul.f32 1.442695, %v3236_v57 }
 0x7f9   :  { %4319 = vpow2.f32 %v3237_v58 }
 0x7ff   :  { %v4320_v46 = vpop.eup %4319 }
 0x800   :  { %v3239_v23 = vsel %vm3232_vm0, %v4320_v46, 0.0 }
 0x801   :  { %3240 = vadd.xlane.f32.xlu2 %v3239_v23 }
 0x874   :  { %v3241_v60 = vpop.xlane.xlu2 %3240 }
 0x875   :  { %4321 = vrcp.f32 %v3241_v60  ;;  %v3253_v2 = vand.u32 2147483648, %v3241_v60  ;;  %v3251_v6 = vand.u32 2147483647, %v3241_v60  ;;  %vm3247_vm5 = vweird.f32 %v3241_v60 }
 0x877   :  { %v3254_v19 = vor.u32 1.1754944e-38, %v3253_v2  ;;  %vm3252_vm7 = vcmp.eq.f32.partialorder %v3251_v6, 8.507059e+37 }
 0x87b   :  { %v4322_v62 = vpop.eup %4321 }
 0x87c   :  { %v3243_v63 = vmul.f32 %v4322_v62, %v3241_v60  ;;  %vm3248_vm2 = vweird.f32 %v4322_v62 }
 0x87d   :  { %vm3249_vm6 = vmor %vm3247_vm5, %vm3248_vm2 }
 0x87e   :  { %v3244_v61 = vsub.f32 1.0, %v3243_v63 }
 0x880   :  { %v3245_v3 = vmul.f32 %v4322_v62, %v3244_v61 }
 0x882   :  { %v3246_v49 = vadd.f32 %v4322_v62, %v3245_v3 }
 0x884   :  { %v3250_v40 = vsel %vm3249_vm6, %v4322_v62, %v3246_v49 }
 0x885   :  { %v3255_v28 = vsel %vm3252_vm7, %v3254_v19, %v3250_v40 }
 0x886   :  { %v3256_v8 = vmul.f32 %v4320_v46, %v3255_v28 }
 0x888   :  { %3257 = vst.msk [vmem:[#allocation7] sm:$0x1] %vm3232_vm0, %v3256_v8 }
 0x889   :  { %3268 = dma.vmem_to_hbm [thread:$0]  %s3264_s12, 16, %s3266_s15, [#allocation4]  }
 0x88a   :  { %4399 = dma.done.wait [#allocation4], 16  }
 0x88b   :  { %4400 = vsyncadd [#allocation4], 4294967280 }
 0x88c   :  { %3273 = vsyncpa [#allocation3], 1 }
 0x88d   :  { %3274 = vsyncpa [#allocation6], 1 }
 0x88e   :  { %3275 = vsyncpa [#allocation4], 1 }

</bundles_post_ra>
